<compile_context>
chip_gen: v7x
topology: tpu7x:2x2x1
jax: 0.10.0
libtpu: 0.0.40
codegen_flags: <defaults>
</compile_context>

<pallas_src>
import jax
import jax.numpy as jnp
from jax.experimental import pallas as pl
from jax.experimental.pallas import tpu as pltpu


def _residual_dwconv_bn_kernel(params_ref, x_ref, o_ref):
    """One grid step == one (batch, channel-block) slab of the NCHW tensor.

    params_ref : SMEM (C*10,) f32 -- per channel: 9 BN-folded 3x3 taps
                 (row-major) followed by the BN-folded bias.
    x_ref/o_ref: VMEM (1, CB, H, W) blocks of the NCHW input / output.
    """
    CB = x_ref.shape[1]
    H = x_ref.shape[2]
    W = x_ref.shape[3]
    c0 = pl.program_id(1) * CB

    # Zero-padding masks of the 3x3 conv (VPU, computed once per grid step and
    # shared by every channel in the block).
    row = jax.lax.broadcasted_iota(jnp.int32, (H, W), 0)
    col = jax.lax.broadcasted_iota(jnp.int32, (H, W), 1)
    row_ok_dn = row < (H - 1)   # reading row i+1 is valid
    row_ok_up = row >= 1        # reading row i-1 is valid
    col_ok_r = col < (W - 1)    # reading col j+1 is valid
    col_ok_l = col >= 1         # reading col j-1 is valid

    zero = jnp.zeros((H, W), jnp.float32)

    for ci in range(CB):                                        # static unroll
        x = x_ref[0, ci].astype(jnp.float32)                    # (H, W)

        # Column-shifted neighbours: 2 XLU rolls + 2 selects per channel.
        xr = jnp.where(col_ok_r, pltpu.roll(x, shift=W - 1, axis=1), zero)  # x[:, j+1]
        xl = jnp.where(col_ok_l, pltpu.roll(x, shift=1, axis=1), zero)      # x[:, j-1]

        base = (c0 + ci) * 10
        w = [params_ref[base + k] for k in range(9)]            # SMEM scalars
        bias = params_ref[base + 9]

        # Horizontal (column) combination per row-offset, then a single row
        # roll per offset: 4 rolls/channel instead of 12 for tap-by-tap.
        c_m1 = w[0] * xl + w[1] * x + w[2] * xr                 # needs row i-1
        c_00 = w[3] * xl + w[4] * x + w[5] * xr
        c_p1 = w[6] * xl + w[7] * x + w[8] * xr                 # needs row i+1

        acc = c_00
        acc = acc + jnp.where(row_ok_up, pltpu.roll(c_m1, shift=1, axis=0), zero)
        acc = acc + jnp.where(row_ok_dn, pltpu.roll(c_p1, shift=H - 1, axis=0), zero)

        o_ref[0, ci] = (x + acc + bias).astype(o_ref.dtype)


def residual_conv2d_bn(x, conv_w, bn_gamma, bn_beta, bn_mean, bn_var,
                       eps=1e-5, c_block=None):
    """y = x + BN(depthwise_conv3x3(x)), inference mode.

    x      : (B, C, H, W)
    conv_w : (C, 1, 3, 3)  PyTorch depthwise weights (OIHW, groups == C)
    bn_*   : (C,)          BatchNorm2d affine params / running statistics
    """
    B, C, H, W = x.shape
    assert conv_w.shape == (C, 1, 3, 3)

    # Fold inference-mode BatchNorm into the conv (exact): scale*conv + bias.
    scale = bn_gamma * jax.lax.rsqrt(bn_var + eps)                  # (C,)
    w_folded = conv_w.reshape(C, 9) * scale[:, None]                # (C, 9)
    bias = bn_beta - bn_mean * scale                                # (C,)
    params = jnp.concatenate([w_folded, bias[:, None]], axis=1)     # (C, 10)
    params = params.reshape(-1).astype(jnp.float32)                 # flat 1-D SMEM

    # Channel-block size: large enough to amortize per-grid-step overhead,
    # small enough that double-buffered in+out tiles stay well under VMEM,
    # and capped so the static channel unroll stays modest.
    if c_block is None:
        plane_bytes = H * W * x.dtype.itemsize
        budget = 8 * 1024 * 1024
        c_block = max(1, min(C, budget // max(4 * plane_bytes, 1), 8))
    while C % c_block != 0:                                         # clean blocking
        c_block -= 1
    # TODO(synk): for feature maps where even a single (H, W) plane exceeds
    # VMEM, additionally tile H with a 1-row halo.

    tile_bytes = c_block * H * W * x.dtype.itemsize
    vmem_limit = min(128 * 1024 * 1024, max(16 * 1024 * 1024, 6 * tile_bytes))

    bytes_accessed = 2 * x.size * x.dtype.itemsize + params.size * 4
    flops = 20 * x.size   # 9 mul + 8 add + bias + residual per output element

    return pl.pallas_call(
        _residual_dwconv_bn_kernel,
        out_shape=jax.ShapeDtypeStruct((B, C, H, W), x.dtype),
        grid=(B, C // c_block),
        in_specs=[
            pl.BlockSpec(memory_space=pltpu.MemorySpace.SMEM),            # params
            pl.BlockSpec((1, c_block, H, W), lambda b, c: (b, c, 0, 0)),  # x slab
        ],
        out_specs=pl.BlockSpec((1, c_block, H, W), lambda b, c: (b, c, 0, 0)),
        compiler_params=pltpu.CompilerParams(
            dimension_semantics=("parallel", "parallel"),
            vmem_limit_bytes=int(vmem_limit),
        ),
        cost_estimate=pl.CostEstimate(
            flops=int(flops),
            transcendentals=0,
            bytes_accessed=int(bytes_accessed),
        ),
    )(params, x)


def _ref_forward(x, conv_w, gamma, beta, mean, var, eps=1e-5):
    """Pure-JAX reference mirroring the PyTorch Residual(Conv2d_BN) forward."""
    C = x.shape[1]
    y = jax.lax.conv_general_dilated(
        x, conv_w, window_strides=(1, 1), padding=((1, 1), (1, 1)),
        dimension_numbers=("NCHW", "OIHW", "NCHW"), feature_group_count=C)
    scale = gamma * jax.lax.rsqrt(var + eps)
    y = y * scale[None, :, None, None] + (beta - mean * scale)[None, :, None, None]
    return x + y


if __name__ == "__main__":
    # Small shapes consistent with the module (depthwise 3x3 residual block on
    # an NCHW feature map). W = 128 keeps the minor dim lane-dense on TPU.
    B, C, H, W = 2, 8, 16, 128

    key = jax.random.PRNGKey(0)
    kx, kw, kg, kb, km, kv = jax.random.split(key, 6)

    x = jax.random.normal(kx, (B, C, H, W), dtype=jnp.float32)
    conv_w = 0.2 * jax.random.normal(kw, (C, 1, 3, 3), dtype=jnp.float32)
    bn_gamma = 1.0 + 0.1 * jax.random.normal(kg, (C,), dtype=jnp.float32)
    bn_beta = 0.1 * jax.random.normal(kb, (C,), dtype=jnp.float32)
    bn_mean = 0.1 * jax.random.normal(km, (C,), dtype=jnp.float32)
    bn_var = 0.5 + jax.random.uniform(kv, (C,), dtype=jnp.float32)

    out = residual_conv2d_bn(x, conv_w, bn_gamma, bn_beta, bn_mean, bn_var)
    out = jax.block_until_ready(out)

    ref = _ref_forward(x, conv_w, bn_gamma, bn_beta, bn_mean, bn_var)
    assert out.shape == (B, C, H, W)
    assert jnp.allclose(out, ref, atol=1e-4, rtol=1e-5), "mismatch vs reference"

    print("KERNEL_OK")
</pallas_src>

<mosaic_0001>
module attributes {stable_mosaic.version = 11 : i64} {
  func.func @_residual_dwconv_bn_kernel(%arg0: i32, %arg1: i32, %arg2: memref<80xf32, #tpu.memory_space<smem>>, %arg3: memref<1x8x16x128xf32, #tpu.memory_space<vmem>>, %arg4: memref<1x8x16x128xf32, #tpu.memory_space<vmem>>) attributes {dimension_semantics = [#tpu.dimension_semantics<parallel>, #tpu.dimension_semantics<parallel>], iteration_bounds = array<i64: 2, 1>, scalar_prefetch = 0 : i64, scratch_operands = 0 : i64, tpu.core_type = #tpu.core_type<tc>, window_params = [{transform_indices = @transform_0, window_bounds = array<i64: 80>}, {transform_indices = @transform_1, window_bounds = array<i64: 1, 8, 16, 128>}, {transform_indices = @transform_2, window_bounds = array<i64: 1, 8, 16, 128>}]} {
    %c8_i32 = arith.constant 8 : i32
    %0 = arith.muli %arg1, %c8_i32 : i32
    %1 = tpu.iota {dimensions = array<i32: 0>} : vector<16x128xi32>
    %2 = tpu.iota {dimensions = array<i32: 1>} : vector<16x128xi32>
    %c15_i32 = arith.constant 15 : i32
    %3 = vector.broadcast %c15_i32 : i32 to vector<16x128xi32>
    %4 = arith.cmpi slt, %1, %3 : vector<16x128xi32>
    %c1_i32 = arith.constant 1 : i32
    %5 = vector.broadcast %c1_i32 : i32 to vector<16x128xi32>
    %6 = arith.cmpi sge, %1, %5 : vector<16x128xi32>
    %c127_i32 = arith.constant 127 : i32
    %7 = vector.broadcast %c127_i32 : i32 to vector<16x128xi32>
    %8 = arith.cmpi slt, %2, %7 : vector<16x128xi32>
    %c1_i32_0 = arith.constant 1 : i32
    %9 = vector.broadcast %c1_i32_0 : i32 to vector<16x128xi32>
    %10 = arith.cmpi sge, %2, %9 : vector<16x128xi32>
    %cst = arith.constant 0.000000e+00 : f32
    %11 = vector.broadcast %cst : f32 to vector<16x128xf32>
    %c0 = arith.constant 0 : index
    %c0_1 = arith.constant 0 : index
    %c0_2 = arith.constant 0 : index
    %c0_3 = arith.constant 0 : index
    %12 = vector.load %arg3[%c0, %c0_1, %c0_2, %c0_3] : memref<1x8x16x128xf32, #tpu.memory_space<vmem>>, vector<1x1x16x128xf32>
    %13 = vector.shape_cast %12 : vector<1x1x16x128xf32> to vector<16x128xf32>
    %c127_i32_4 = arith.constant 127 : i32
    %14 = tpu.dynamic_rotate %13 by %c127_i32_4 dim 1 : vector<16x128xf32>, i32 -> vector<16x128xf32>
    %15 = arith.select %8, %14, %11 : vector<16x128xi1>, vector<16x128xf32>
    %c1_i32_5 = arith.constant 1 : i32
    %16 = tpu.dynamic_rotate %13 by %c1_i32_5 dim 1 : vector<16x128xf32>, i32 -> vector<16x128xf32>
    %17 = arith.select %10, %16, %11 : vector<16x128xi1>, vector<16x128xf32>
    %c0_i32 = arith.constant 0 : i32
    %18 = arith.addi %0, %c0_i32 : i32
    %c10_i32 = arith.constant 10 : i32
    %19 = arith.muli %18, %c10_i32 : i32
    %c0_i32_6 = arith.constant 0 : i32
    %20 = arith.addi %19, %c0_i32_6 : i32
    %21 = arith.index_cast %20 : i32 to index
    %22 = memref.load %arg2[%21] : memref<80xf32, #tpu.memory_space<smem>>
    %c1_i32_7 = arith.constant 1 : i32
    %23 = arith.addi %19, %c1_i32_7 : i32
    %24 = arith.index_cast %23 : i32 to index
    %25 = memref.load %arg2[%24] : memref<80xf32, #tpu.memory_space<smem>>
    %c2_i32 = arith.constant 2 : i32
    %26 = arith.addi %19, %c2_i32 : i32
    %27 = arith.index_cast %26 : i32 to index
    %28 = memref.load %arg2[%27] : memref<80xf32, #tpu.memory_space<smem>>
    %c3_i32 = arith.constant 3 : i32
    %29 = arith.addi %19, %c3_i32 : i32
    %30 = arith.index_cast %29 : i32 to index
    %31 = memref.load %arg2[%30] : memref<80xf32, #tpu.memory_space<smem>>
    %c4_i32 = arith.constant 4 : i32
    %32 = arith.addi %19, %c4_i32 : i32
    %33 = arith.index_cast %32 : i32 to index
    %34 = memref.load %arg2[%33] : memref<80xf32, #tpu.memory_space<smem>>
    %c5_i32 = arith.constant 5 : i32
    %35 = arith.addi %19, %c5_i32 : i32
    %36 = arith.index_cast %35 : i32 to index
    %37 = memref.load %arg2[%36] : memref<80xf32, #tpu.memory_space<smem>>
    %c6_i32 = arith.constant 6 : i32
    %38 = arith.addi %19, %c6_i32 : i32
    %39 = arith.index_cast %38 : i32 to index
    %40 = memref.load %arg2[%39] : memref<80xf32, #tpu.memory_space<smem>>
    %c7_i32 = arith.constant 7 : i32
    %41 = arith.addi %19, %c7_i32 : i32
    %42 = arith.index_cast %41 : i32 to index
    %43 = memref.load %arg2[%42] : memref<80xf32, #tpu.memory_space<smem>>
    %c8_i32_8 = arith.constant 8 : i32
    %44 = arith.addi %19, %c8_i32_8 : i32
    %45 = arith.index_cast %44 : i32 to index
    %46 = memref.load %arg2[%45] : memref<80xf32, #tpu.memory_space<smem>>
    %c9_i32 = arith.constant 9 : i32
    %47 = arith.addi %19, %c9_i32 : i32
    %48 = arith.index_cast %47 : i32 to index
    %49 = memref.load %arg2[%48] : memref<80xf32, #tpu.memory_space<smem>>
    %50 = vector.broadcast %22 : f32 to vector<16x128xf32>
    %51 = arith.mulf %50, %17 : vector<16x128xf32>
    %52 = vector.broadcast %25 : f32 to vector<16x128xf32>
    %53 = arith.mulf %52, %13 : vector<16x128xf32>
    %54 = arith.addf %51, %53 : vector<16x128xf32>
    %55 = vector.broadcast %28 : f32 to vector<16x128xf32>
    %56 = arith.mulf %55, %15 : vector<16x128xf32>
    %57 = arith.addf %54, %56 : vector<16x128xf32>
    %58 = vector.broadcast %31 : f32 to vector<16x128xf32>
    %59 = arith.mulf %58, %17 : vector<16x128xf32>
    %60 = vector.broadcast %34 : f32 to vector<16x128xf32>
    %61 = arith.mulf %60, %13 : vector<16x128xf32>
    %62 = arith.addf %59, %61 : vector<16x128xf32>
    %63 = vector.broadcast %37 : f32 to vector<16x128xf32>
    %64 = arith.mulf %63, %15 : vector<16x128xf32>
    %65 = arith.addf %62, %64 : vector<16x128xf32>
    %66 = vector.broadcast %40 : f32 to vector<16x128xf32>
    %67 = arith.mulf %66, %17 : vector<16x128xf32>
    %68 = vector.broadcast %43 : f32 to vector<16x128xf32>
    %69 = arith.mulf %68, %13 : vector<16x128xf32>
    %70 = arith.addf %67, %69 : vector<16x128xf32>
    %71 = vector.broadcast %46 : f32 to vector<16x128xf32>
    %72 = arith.mulf %71, %15 : vector<16x128xf32>
    %73 = arith.addf %70, %72 : vector<16x128xf32>
    %c1_i32_9 = arith.constant 1 : i32
    %74 = tpu.dynamic_rotate %57 by %c1_i32_9 dim 0 : vector<16x128xf32>, i32 -> vector<16x128xf32>
    %75 = arith.select %6, %74, %11 : vector<16x128xi1>, vector<16x128xf32>
    %76 = arith.addf %65, %75 : vector<16x128xf32>
    %c15_i32_10 = arith.constant 15 : i32
    %77 = tpu.dynamic_rotate %73 by %c15_i32_10 dim 0 : vector<16x128xf32>, i32 -> vector<16x128xf32>
    %78 = arith.select %4, %77, %11 : vector<16x128xi1>, vector<16x128xf32>
    %79 = arith.addf %76, %78 : vector<16x128xf32>
    %80 = arith.addf %13, %79 : vector<16x128xf32>
    %81 = vector.broadcast %49 : f32 to vector<16x128xf32>
    %82 = arith.addf %80, %81 : vector<16x128xf32>
    %c0_11 = arith.constant 0 : index
    %c0_12 = arith.constant 0 : index
    %c0_13 = arith.constant 0 : index
    %c0_14 = arith.constant 0 : index
    %83 = vector.load %arg4[%c0_11, %c0_12, %c0_13, %c0_14] : memref<1x8x16x128xf32, #tpu.memory_space<vmem>>, vector<1x1x16x128xf32>
    %84 = vector.shape_cast %83 : vector<1x1x16x128xf32> to vector<16x128xf32>
    %85 = vector.shape_cast %82 : vector<16x128xf32> to vector<1x1x16x128xf32>
    tpu.vector_store %arg4[%c0_11, %c0_12, %c0_13, %c0_14], %85 {strides = array<i32>} : memref<1x8x16x128xf32, #tpu.memory_space<vmem>>, vector<1x1x16x128xf32>,
    %c0_15 = arith.constant 0 : index
    %c1 = arith.constant 1 : index
    %c0_16 = arith.constant 0 : index
    %c0_17 = arith.constant 0 : index
    %86 = vector.load %arg3[%c0_15, %c1, %c0_16, %c0_17] : memref<1x8x16x128xf32, #tpu.memory_space<vmem>>, vector<1x1x16x128xf32>
    %87 = vector.shape_cast %86 : vector<1x1x16x128xf32> to vector<16x128xf32>
    %c127_i32_18 = arith.constant 127 : i32
    %88 = tpu.dynamic_rotate %87 by %c127_i32_18 dim 1 : vector<16x128xf32>, i32 -> vector<16x128xf32>
    %89 = arith.select %8, %88, %11 : vector<16x128xi1>, vector<16x128xf32>
    %c1_i32_19 = arith.constant 1 : i32
    %90 = tpu.dynamic_rotate %87 by %c1_i32_19 dim 1 : vector<16x128xf32>, i32 -> vector<16x128xf32>
    %91 = arith.select %10, %90, %11 : vector<16x128xi1>, vector<16x128xf32>
    %c1_i32_20 = arith.constant 1 : i32
    %92 = arith.addi %0, %c1_i32_20 : i32
    %c10_i32_21 = arith.constant 10 : i32
    %93 = arith.muli %92, %c10_i32_21 : i32
    %c0_i32_22 = arith.constant 0 : i32
    %94 = arith.addi %93, %c0_i32_22 : i32
    %95 = arith.index_cast %94 : i32 to index
    %96 = memref.load %arg2[%95] : memref<80xf32, #tpu.memory_space<smem>>
    %c1_i32_23 = arith.constant 1 : i32
    %97 = arith.addi %93, %c1_i32_23 : i32
    %98 = arith.index_cast %97 : i32 to index
    %99 = memref.load %arg2[%98] : memref<80xf32, #tpu.memory_space<smem>>
    %c2_i32_24 = arith.constant 2 : i32
    %100 = arith.addi %93, %c2_i32_24 : i32
    %101 = arith.index_cast %100 : i32 to index
    %102 = memref.load %arg2[%101] : memref<80xf32, #tpu.memory_space<smem>>
    %c3_i32_25 = arith.constant 3 : i32
    %103 = arith.addi %93, %c3_i32_25 : i32
    %104 = arith.index_cast %103 : i32 to index
    %105 = memref.load %arg2[%104] : memref<80xf32, #tpu.memory_space<smem>>
    %c4_i32_26 = arith.constant 4 : i32
    %106 = arith.addi %93, %c4_i32_26 : i32
    %107 = arith.index_cast %106 : i32 to index
    %108 = memref.load %arg2[%107] : memref<80xf32, #tpu.memory_space<smem>>
    %c5_i32_27 = arith.constant 5 : i32
    %109 = arith.addi %93, %c5_i32_27 : i32
    %110 = arith.index_cast %109 : i32 to index
    %111 = memref.load %arg2[%110] : memref<80xf32, #tpu.memory_space<smem>>
    %c6_i32_28 = arith.constant 6 : i32
    %112 = arith.addi %93, %c6_i32_28 : i32
    %113 = arith.index_cast %112 : i32 to index
    %114 = memref.load %arg2[%113] : memref<80xf32, #tpu.memory_space<smem>>
    %c7_i32_29 = arith.constant 7 : i32
    %115 = arith.addi %93, %c7_i32_29 : i32
    %116 = arith.index_cast %115 : i32 to index
    %117 = memref.load %arg2[%116] : memref<80xf32, #tpu.memory_space<smem>>
    %c8_i32_30 = arith.constant 8 : i32
    %118 = arith.addi %93, %c8_i32_30 : i32
    %119 = arith.index_cast %118 : i32 to index
    %120 = memref.load %arg2[%119] : memref<80xf32, #tpu.memory_space<smem>>
    %c9_i32_31 = arith.constant 9 : i32
    %121 = arith.addi %93, %c9_i32_31 : i32
    %122 = arith.index_cast %121 : i32 to index
    %123 = memref.load %arg2[%122] : memref<80xf32, #tpu.memory_space<smem>>
    %124 = vector.broadcast %96 : f32 to vector<16x128xf32>
    %125 = arith.mulf %124, %91 : vector<16x128xf32>
    %126 = vector.broadcast %99 : f32 to vector<16x128xf32>
    %127 = arith.mulf %126, %87 : vector<16x128xf32>
    %128 = arith.addf %125, %127 : vector<16x128xf32>
    %129 = vector.broadcast %102 : f32 to vector<16x128xf32>
    %130 = arith.mulf %129, %89 : vector<16x128xf32>
    %131 = arith.addf %128, %130 : vector<16x128xf32>
    %132 = vector.broadcast %105 : f32 to vector<16x128xf32>
    %133 = arith.mulf %132, %91 : vector<16x128xf32>
    %134 = vector.broadcast %108 : f32 to vector<16x128xf32>
    %135 = arith.mulf %134, %87 : vector<16x128xf32>
    %136 = arith.addf %133, %135 : vector<16x128xf32>
    %137 = vector.broadcast %111 : f32 to vector<16x128xf32>
    %138 = arith.mulf %137, %89 : vector<16x128xf32>
    %139 = arith.addf %136, %138 : vector<16x128xf32>
    %140 = vector.broadcast %114 : f32 to vector<16x128xf32>
    %141 = arith.mulf %140, %91 : vector<16x128xf32>
    %142 = vector.broadcast %117 : f32 to vector<16x128xf32>
    %143 = arith.mulf %142, %87 : vector<16x128xf32>
    %144 = arith.addf %141, %143 : vector<16x128xf32>
    %145 = vector.broadcast %120 : f32 to vector<16x128xf32>
    %146 = arith.mulf %145, %89 : vector<16x128xf32>
    %147 = arith.addf %144, %146 : vector<16x128xf32>
    %c1_i32_32 = arith.constant 1 : i32
    %148 = tpu.dynamic_rotate %131 by %c1_i32_32 dim 0 : vector<16x128xf32>, i32 -> vector<16x128xf32>
    %149 = arith.select %6, %148, %11 : vector<16x128xi1>, vector<16x128xf32>
    %150 = arith.addf %139, %149 : vector<16x128xf32>
    %c15_i32_33 = arith.constant 15 : i32
    %151 = tpu.dynamic_rotate %147 by %c15_i32_33 dim 0 : vector<16x128xf32>, i32 -> vector<16x128xf32>
    %152 = arith.select %4, %151, %11 : vector<16x128xi1>, vector<16x128xf32>
    %153 = arith.addf %150, %152 : vector<16x128xf32>
    %154 = arith.addf %87, %153 : vector<16x128xf32>
    %155 = vector.broadcast %123 : f32 to vector<16x128xf32>
    %156 = arith.addf %154, %155 : vector<16x128xf32>
    %c0_34 = arith.constant 0 : index
    %c1_35 = arith.constant 1 : index
    %c0_36 = arith.constant 0 : index
    %c0_37 = arith.constant 0 : index
    %157 = vector.load %arg4[%c0_34, %c1_35, %c0_36, %c0_37] : memref<1x8x16x128xf32, #tpu.memory_space<vmem>>, vector<1x1x16x128xf32>
    %158 = vector.shape_cast %157 : vector<1x1x16x128xf32> to vector<16x128xf32>
    %159 = vector.shape_cast %156 : vector<16x128xf32> to vector<1x1x16x128xf32>
    tpu.vector_store %arg4[%c0_34, %c1_35, %c0_36, %c0_37], %159 {strides = array<i32>} : memref<1x8x16x128xf32, #tpu.memory_space<vmem>>, vector<1x1x16x128xf32>,
    %c0_38 = arith.constant 0 : index
    %c2 = arith.constant 2 : index
    %c0_39 = arith.constant 0 : index
    %c0_40 = arith.constant 0 : index
    %160 = vector.load %arg3[%c0_38, %c2, %c0_39, %c0_40] : memref<1x8x16x128xf32, #tpu.memory_space<vmem>>, vector<1x1x16x128xf32>
    %161 = vector.shape_cast %160 : vector<1x1x16x128xf32> to vector<16x128xf32>
    %c127_i32_41 = arith.constant 127 : i32
    %162 = tpu.dynamic_rotate %161 by %c127_i32_41 dim 1 : vector<16x128xf32>, i32 -> vector<16x128xf32>
    %163 = arith.select %8, %162, %11 : vector<16x128xi1>, vector<16x128xf32>
    %c1_i32_42 = arith.constant 1 : i32
    %164 = tpu.dynamic_rotate %161 by %c1_i32_42 dim 1 : vector<16x128xf32>, i32 -> vector<16x128xf32>
    %165 = arith.select %10, %164, %11 : vector<16x128xi1>, vector<16x128xf32>
    %c2_i32_43 = arith.constant 2 : i32
    %166 = arith.addi %0, %c2_i32_43 : i32
    %c10_i32_44 = arith.constant 10 : i32
    %167 = arith.muli %166, %c10_i32_44 : i32
    %c0_i32_45 = arith.constant 0 : i32
    %168 = arith.addi %167, %c0_i32_45 : i32
    %169 = arith.index_cast %168 : i32 to index
    %170 = memref.load %arg2[%169] : memref<80xf32, #tpu.memory_space<smem>>
    %c1_i32_46 = arith.constant 1 : i32
    %171 = arith.addi %167, %c1_i32_46 : i32
    %172 = arith.index_cast %171 : i32 to index
    %173 = memref.load %arg2[%172] : memref<80xf32, #tpu.memory_space<smem>>
    %c2_i32_47 = arith.constant 2 : i32
    %174 = arith.addi %167, %c2_i32_47 : i32
    %175 = arith.index_cast %174 : i32 to index
    %176 = memref.load %arg2[%175] : memref<80xf32, #tpu.memory_space<smem>>
    %c3_i32_48 = arith.constant 3 : i32
    %177 = arith.addi %167, %c3_i32_48 : i32
    %178 = arith.index_cast %177 : i32 to index
    %179 = memref.load %arg2[%178] : memref<80xf32, #tpu.memory_space<smem>>
    %c4_i32_49 = arith.constant 4 : i32
    %180 = arith.addi %167, %c4_i32_49 : i32
    %181 = arith.index_cast %180 : i32 to index
    %182 = memref.load %arg2[%181] : memref<80xf32, #tpu.memory_space<smem>>
    %c5_i32_50 = arith.constant 5 : i32
    %183 = arith.addi %167, %c5_i32_50 : i32
    %184 = arith.index_cast %183 : i32 to index
    %185 = memref.load %arg2[%184] : memref<80xf32, #tpu.memory_space<smem>>
    %c6_i32_51 = arith.constant 6 : i32
    %186 = arith.addi %167, %c6_i32_51 : i32
    %187 = arith.index_cast %186 : i32 to index
    %188 = memref.load %arg2[%187] : memref<80xf32, #tpu.memory_space<smem>>
    %c7_i32_52 = arith.constant 7 : i32
    %189 = arith.addi %167, %c7_i32_52 : i32
    %190 = arith.index_cast %189 : i32 to index
    %191 = memref.load %arg2[%190] : memref<80xf32, #tpu.memory_space<smem>>
    %c8_i32_53 = arith.constant 8 : i32
    %192 = arith.addi %167, %c8_i32_53 : i32
    %193 = arith.index_cast %192 : i32 to index
    %194 = memref.load %arg2[%193] : memref<80xf32, #tpu.memory_space<smem>>
    %c9_i32_54 = arith.constant 9 : i32
    %195 = arith.addi %167, %c9_i32_54 : i32
    %196 = arith.index_cast %195 : i32 to index
    %197 = memref.load %arg2[%196] : memref<80xf32, #tpu.memory_space<smem>>
    %198 = vector.broadcast %170 : f32 to vector<16x128xf32>
    %199 = arith.mulf %198, %165 : vector<16x128xf32>
    %200 = vector.broadcast %173 : f32 to vector<16x128xf32>
    %201 = arith.mulf %200, %161 : vector<16x128xf32>
    %202 = arith.addf %199, %201 : vector<16x128xf32>
    %203 = vector.broadcast %176 : f32 to vector<16x128xf32>
    %204 = arith.mulf %203, %163 : vector<16x128xf32>
    %205 = arith.addf %202, %204 : vector<16x128xf32>
    %206 = vector.broadcast %179 : f32 to vector<16x128xf32>
    %207 = arith.mulf %206, %165 : vector<16x128xf32>
    %208 = vector.broadcast %182 : f32 to vector<16x128xf32>
    %209 = arith.mulf %208, %161 : vector<16x128xf32>
    %210 = arith.addf %207, %209 : vector<16x128xf32>
    %211 = vector.broadcast %185 : f32 to vector<16x128xf32>
    %212 = arith.mulf %211, %163 : vector<16x128xf32>
    %213 = arith.addf %210, %212 : vector<16x128xf32>
    %214 = vector.broadcast %188 : f32 to vector<16x128xf32>
    %215 = arith.mulf %214, %165 : vector<16x128xf32>
    %216 = vector.broadcast %191 : f32 to vector<16x128xf32>
    %217 = arith.mulf %216, %161 : vector<16x128xf32>
    %218 = arith.addf %215, %217 : vector<16x128xf32>
    %219 = vector.broadcast %194 : f32 to vector<16x128xf32>
    %220 = arith.mulf %219, %163 : vector<16x128xf32>
    %221 = arith.addf %218, %220 : vector<16x128xf32>
    %c1_i32_55 = arith.constant 1 : i32
    %222 = tpu.dynamic_rotate %205 by %c1_i32_55 dim 0 : vector<16x128xf32>, i32 -> vector<16x128xf32>
    %223 = arith.select %6, %222, %11 : vector<16x128xi1>, vector<16x128xf32>
    %224 = arith.addf %213, %223 : vector<16x128xf32>
    %c15_i32_56 = arith.constant 15 : i32
    %225 = tpu.dynamic_rotate %221 by %c15_i32_56 dim 0 : vector<16x128xf32>, i32 -> vector<16x128xf32>
    %226 = arith.select %4, %225, %11 : vector<16x128xi1>, vector<16x128xf32>
    %227 = arith.addf %224, %226 : vector<16x128xf32>
    %228 = arith.addf %161, %227 : vector<16x128xf32>
    %229 = vector.broadcast %197 : f32 to vector<16x128xf32>
    %230 = arith.addf %228, %229 : vector<16x128xf32>
    %c0_57 = arith.constant 0 : index
    %c2_58 = arith.constant 2 : index
    %c0_59 = arith.constant 0 : index
    %c0_60 = arith.constant 0 : index
    %231 = vector.load %arg4[%c0_57, %c2_58, %c0_59, %c0_60] : memref<1x8x16x128xf32, #tpu.memory_space<vmem>>, vector<1x1x16x128xf32>
    %232 = vector.shape_cast %231 : vector<1x1x16x128xf32> to vector<16x128xf32>
    %233 = vector.shape_cast %230 : vector<16x128xf32> to vector<1x1x16x128xf32>
    tpu.vector_store %arg4[%c0_57, %c2_58, %c0_59, %c0_60], %233 {strides = array<i32>} : memref<1x8x16x128xf32, #tpu.memory_space<vmem>>, vector<1x1x16x128xf32>,
    %c0_61 = arith.constant 0 : index
    %c3 = arith.constant 3 : index
    %c0_62 = arith.constant 0 : index
    %c0_63 = arith.constant 0 : index
    %234 = vector.load %arg3[%c0_61, %c3, %c0_62, %c0_63] : memref<1x8x16x128xf32, #tpu.memory_space<vmem>>, vector<1x1x16x128xf32>
    %235 = vector.shape_cast %234 : vector<1x1x16x128xf32> to vector<16x128xf32>
    %c127_i32_64 = arith.constant 127 : i32
    %236 = tpu.dynamic_rotate %235 by %c127_i32_64 dim 1 : vector<16x128xf32>, i32 -> vector<16x128xf32>
    %237 = arith.select %8, %236, %11 : vector<16x128xi1>, vector<16x128xf32>
    %c1_i32_65 = arith.constant 1 : i32
    %238 = tpu.dynamic_rotate %235 by %c1_i32_65 dim 1 : vector<16x128xf32>, i32 -> vector<16x128xf32>
    %239 = arith.select %10, %238, %11 : vector<16x128xi1>, vector<16x128xf32>
    %c3_i32_66 = arith.constant 3 : i32
    %240 = arith.addi %0, %c3_i32_66 : i32
    %c10_i32_67 = arith.constant 10 : i32
    %241 = arith.muli %240, %c10_i32_67 : i32
    %c0_i32_68 = arith.constant 0 : i32
    %242 = arith.addi %241, %c0_i32_68 : i32
    %243 = arith.index_cast %242 : i32 to index
    %244 = memref.load %arg2[%243] : memref<80xf32, #tpu.memory_space<smem>>
    %c1_i32_69 = arith.constant 1 : i32
    %245 = arith.addi %241, %c1_i32_69 : i32
    %246 = arith.index_cast %245 : i32 to index
    %247 = memref.load %arg2[%246] : memref<80xf32, #tpu.memory_space<smem>>
    %c2_i32_70 = arith.constant 2 : i32
    %248 = arith.addi %241, %c2_i32_70 : i32
    %249 = arith.index_cast %248 : i32 to index
    %250 = memref.load %arg2[%249] : memref<80xf32, #tpu.memory_space<smem>>
    %c3_i32_71 = arith.constant 3 : i32
    %251 = arith.addi %241, %c3_i32_71 : i32
    %252 = arith.index_cast %251 : i32 to index
    %253 = memref.load %arg2[%252] : memref<80xf32, #tpu.memory_space<smem>>
    %c4_i32_72 = arith.constant 4 : i32
    %254 = arith.addi %241, %c4_i32_72 : i32
    %255 = arith.index_cast %254 : i32 to index
    %256 = memref.load %arg2[%255] : memref<80xf32, #tpu.memory_space<smem>>
    %c5_i32_73 = arith.constant 5 : i32
    %257 = arith.addi %241, %c5_i32_73 : i32
    %258 = arith.index_cast %257 : i32 to index
    %259 = memref.load %arg2[%258] : memref<80xf32, #tpu.memory_space<smem>>
    %c6_i32_74 = arith.constant 6 : i32
    %260 = arith.addi %241, %c6_i32_74 : i32
    %261 = arith.index_cast %260 : i32 to index
    %262 = memref.load %arg2[%261] : memref<80xf32, #tpu.memory_space<smem>>
    %c7_i32_75 = arith.constant 7 : i32
    %263 = arith.addi %241, %c7_i32_75 : i32
    %264 = arith.index_cast %263 : i32 to index
    %265 = memref.load %arg2[%264] : memref<80xf32, #tpu.memory_space<smem>>
    %c8_i32_76 = arith.constant 8 : i32
    %266 = arith.addi %241, %c8_i32_76 : i32
    %267 = arith.index_cast %266 : i32 to index
    %268 = memref.load %arg2[%267] : memref<80xf32, #tpu.memory_space<smem>>
    %c9_i32_77 = arith.constant 9 : i32
    %269 = arith.addi %241, %c9_i32_77 : i32
    %270 = arith.index_cast %269 : i32 to index
    %271 = memref.load %arg2[%270] : memref<80xf32, #tpu.memory_space<smem>>
    %272 = vector.broadcast %244 : f32 to vector<16x128xf32>
    %273 = arith.mulf %272, %239 : vector<16x128xf32>
    %274 = vector.broadcast %247 : f32 to vector<16x128xf32>
    %275 = arith.mulf %274, %235 : vector<16x128xf32>
    %276 = arith.addf %273, %275 : vector<16x128xf32>
    %277 = vector.broadcast %250 : f32 to vector<16x128xf32>
    %278 = arith.mulf %277, %237 : vector<16x128xf32>
    %279 = arith.addf %276, %278 : vector<16x128xf32>
    %280 = vector.broadcast %253 : f32 to vector<16x128xf32>
    %281 = arith.mulf %280, %239 : vector<16x128xf32>
    %282 = vector.broadcast %256 : f32 to vector<16x128xf32>
    %283 = arith.mulf %282, %235 : vector<16x128xf32>
    %284 = arith.addf %281, %283 : vector<16x128xf32>
    %285 = vector.broadcast %259 : f32 to vector<16x128xf32>
    %286 = arith.mulf %285, %237 : vector<16x128xf32>
    %287 = arith.addf %284, %286 : vector<16x128xf32>
    %288 = vector.broadcast %262 : f32 to vector<16x128xf32>
    %289 = arith.mulf %288, %239 : vector<16x128xf32>
    %290 = vector.broadcast %265 : f32 to vector<16x128xf32>
    %291 = arith.mulf %290, %235 : vector<16x128xf32>
    %292 = arith.addf %289, %291 : vector<16x128xf32>
    %293 = vector.broadcast %268 : f32 to vector<16x128xf32>
    %294 = arith.mulf %293, %237 : vector<16x128xf32>
    %295 = arith.addf %292, %294 : vector<16x128xf32>
    %c1_i32_78 = arith.constant 1 : i32
    %296 = tpu.dynamic_rotate %279 by %c1_i32_78 dim 0 : vector<16x128xf32>, i32 -> vector<16x128xf32>
    %297 = arith.select %6, %296, %11 : vector<16x128xi1>, vector<16x128xf32>
    %298 = arith.addf %287, %297 : vector<16x128xf32>
    %c15_i32_79 = arith.constant 15 : i32
    %299 = tpu.dynamic_rotate %295 by %c15_i32_79 dim 0 : vector<16x128xf32>, i32 -> vector<16x128xf32>
    %300 = arith.select %4, %299, %11 : vector<16x128xi1>, vector<16x128xf32>
    %301 = arith.addf %298, %300 : vector<16x128xf32>
    %302 = arith.addf %235, %301 : vector<16x128xf32>
    %303 = vector.broadcast %271 : f32 to vector<16x128xf32>
    %304 = arith.addf %302, %303 : vector<16x128xf32>
    %c0_80 = arith.constant 0 : index
    %c3_81 = arith.constant 3 : index
    %c0_82 = arith.constant 0 : index
    %c0_83 = arith.constant 0 : index
    %305 = vector.load %arg4[%c0_80, %c3_81, %c0_82, %c0_83] : memref<1x8x16x128xf32, #tpu.memory_space<vmem>>, vector<1x1x16x128xf32>
    %306 = vector.shape_cast %305 : vector<1x1x16x128xf32> to vector<16x128xf32>
    %307 = vector.shape_cast %304 : vector<16x128xf32> to vector<1x1x16x128xf32>
    tpu.vector_store %arg4[%c0_80, %c3_81, %c0_82, %c0_83], %307 {strides = array<i32>} : memref<1x8x16x128xf32, #tpu.memory_space<vmem>>, vector<1x1x16x128xf32>,
    %c0_84 = arith.constant 0 : index
    %c4 = arith.constant 4 : index
    %c0_85 = arith.constant 0 : index
    %c0_86 = arith.constant 0 : index
    %308 = vector.load %arg3[%c0_84, %c4, %c0_85, %c0_86] : memref<1x8x16x128xf32, #tpu.memory_space<vmem>>, vector<1x1x16x128xf32>
    %309 = vector.shape_cast %308 : vector<1x1x16x128xf32> to vector<16x128xf32>
    %c127_i32_87 = arith.constant 127 : i32
    %310 = tpu.dynamic_rotate %309 by %c127_i32_87 dim 1 : vector<16x128xf32>, i32 -> vector<16x128xf32>
    %311 = arith.select %8, %310, %11 : vector<16x128xi1>, vector<16x128xf32>
    %c1_i32_88 = arith.constant 1 : i32
    %312 = tpu.dynamic_rotate %309 by %c1_i32_88 dim 1 : vector<16x128xf32>, i32 -> vector<16x128xf32>
    %313 = arith.select %10, %312, %11 : vector<16x128xi1>, vector<16x128xf32>
    %c4_i32_89 = arith.constant 4 : i32
    %314 = arith.addi %0, %c4_i32_89 : i32
    %c10_i32_90 = arith.constant 10 : i32
    %315 = arith.muli %314, %c10_i32_90 : i32
    %c0_i32_91 = arith.constant 0 : i32
    %316 = arith.addi %315, %c0_i32_91 : i32
    %317 = arith.index_cast %316 : i32 to index
    %318 = memref.load %arg2[%317] : memref<80xf32, #tpu.memory_space<smem>>
    %c1_i32_92 = arith.constant 1 : i32
    %319 = arith.addi %315, %c1_i32_92 : i32
    %320 = arith.index_cast %319 : i32 to index
    %321 = memref.load %arg2[%320] : memref<80xf32, #tpu.memory_space<smem>>
    %c2_i32_93 = arith.constant 2 : i32
    %322 = arith.addi %315, %c2_i32_93 : i32
    %323 = arith.index_cast %322 : i32 to index
    %324 = memref.load %arg2[%323] : memref<80xf32, #tpu.memory_space<smem>>
    %c3_i32_94 = arith.constant 3 : i32
    %325 = arith.addi %315, %c3_i32_94 : i32
    %326 = arith.index_cast %325 : i32 to index
    %327 = memref.load %arg2[%326] : memref<80xf32, #tpu.memory_space<smem>>
    %c4_i32_95 = arith.constant 4 : i32
    %328 = arith.addi %315, %c4_i32_95 : i32
    %329 = arith.index_cast %328 : i32 to index
    %330 = memref.load %arg2[%329] : memref<80xf32, #tpu.memory_space<smem>>
    %c5_i32_96 = arith.constant 5 : i32
    %331 = arith.addi %315, %c5_i32_96 : i32
    %332 = arith.index_cast %331 : i32 to index
    %333 = memref.load %arg2[%332] : memref<80xf32, #tpu.memory_space<smem>>
    %c6_i32_97 = arith.constant 6 : i32
    %334 = arith.addi %315, %c6_i32_97 : i32
    %335 = arith.index_cast %334 : i32 to index
    %336 = memref.load %arg2[%335] : memref<80xf32, #tpu.memory_space<smem>>
    %c7_i32_98 = arith.constant 7 : i32
    %337 = arith.addi %315, %c7_i32_98 : i32
    %338 = arith.index_cast %337 : i32 to index
    %339 = memref.load %arg2[%338] : memref<80xf32, #tpu.memory_space<smem>>
    %c8_i32_99 = arith.constant 8 : i32
    %340 = arith.addi %315, %c8_i32_99 : i32
    %341 = arith.index_cast %340 : i32 to index
    %342 = memref.load %arg2[%341] : memref<80xf32, #tpu.memory_space<smem>>
    %c9_i32_100 = arith.constant 9 : i32
    %343 = arith.addi %315, %c9_i32_100 : i32
    %344 = arith.index_cast %343 : i32 to index
    %345 = memref.load %arg2[%344] : memref<80xf32, #tpu.memory_space<smem>>
    %346 = vector.broadcast %318 : f32 to vector<16x128xf32>
    %347 = arith.mulf %346, %313 : vector<16x128xf32>
    %348 = vector.broadcast %321 : f32 to vector<16x128xf32>
    %349 = arith.mulf %348, %309 : vector<16x128xf32>
    %350 = arith.addf %347, %349 : vector<16x128xf32>
    %351 = vector.broadcast %324 : f32 to vector<16x128xf32>
    %352 = arith.mulf %351, %311 : vector<16x128xf32>
    %353 = arith.addf %350, %352 : vector<16x128xf32>
    %354 = vector.broadcast %327 : f32 to vector<16x128xf32>
    %355 = arith.mulf %354, %313 : vector<16x128xf32>
    %356 = vector.broadcast %330 : f32 to vector<16x128xf32>
    %357 = arith.mulf %356, %309 : vector<16x128xf32>
    %358 = arith.addf %355, %357 : vector<16x128xf32>
    %359 = vector.broadcast %333 : f32 to vector<16x128xf32>
    %360 = arith.mulf %359, %311 : vector<16x128xf32>
    %361 = arith.addf %358, %360 : vector<16x128xf32>
    %362 = vector.broadcast %336 : f32 to vector<16x128xf32>
    %363 = arith.mulf %362, %313 : vector<16x128xf32>
    %364 = vector.broadcast %339 : f32 to vector<16x128xf32>
    %365 = arith.mulf %364, %309 : vector<16x128xf32>
    %366 = arith.addf %363, %365 : vector<16x128xf32>
    %367 = vector.broadcast %342 : f32 to vector<16x128xf32>
    %368 = arith.mulf %367, %311 : vector<16x128xf32>
    %369 = arith.addf %366, %368 : vector<16x128xf32>
    %c1_i32_101 = arith.constant 1 : i32
    %370 = tpu.dynamic_rotate %353 by %c1_i32_101 dim 0 : vector<16x128xf32>, i32 -> vector<16x128xf32>
    %371 = arith.select %6, %370, %11 : vector<16x128xi1>, vector<16x128xf32>
    %372 = arith.addf %361, %371 : vector<16x128xf32>
    %c15_i32_102 = arith.constant 15 : i32
    %373 = tpu.dynamic_rotate %369 by %c15_i32_102 dim 0 : vector<16x128xf32>, i32 -> vector<16x128xf32>
    %374 = arith.select %4, %373, %11 : vector<16x128xi1>, vector<16x128xf32>
    %375 = arith.addf %372, %374 : vector<16x128xf32>
    %376 = arith.addf %309, %375 : vector<16x128xf32>
    %377 = vector.broadcast %345 : f32 to vector<16x128xf32>
    %378 = arith.addf %376, %377 : vector<16x128xf32>
    %c0_103 = arith.constant 0 : index
    %c4_104 = arith.constant 4 : index
    %c0_105 = arith.constant 0 : index
    %c0_106 = arith.constant 0 : index
    %379 = vector.load %arg4[%c0_103, %c4_104, %c0_105, %c0_106] : memref<1x8x16x128xf32, #tpu.memory_space<vmem>>, vector<1x1x16x128xf32>
    %380 = vector.shape_cast %379 : vector<1x1x16x128xf32> to vector<16x128xf32>
    %381 = vector.shape_cast %378 : vector<16x128xf32> to vector<1x1x16x128xf32>
    tpu.vector_store %arg4[%c0_103, %c4_104, %c0_105, %c0_106], %381 {strides = array<i32>} : memref<1x8x16x128xf32, #tpu.memory_space<vmem>>, vector<1x1x16x128xf32>,
    %c0_107 = arith.constant 0 : index
    %c5 = arith.constant 5 : index
    %c0_108 = arith.constant 0 : index
    %c0_109 = arith.constant 0 : index
    %382 = vector.load %arg3[%c0_107, %c5, %c0_108, %c0_109] : memref<1x8x16x128xf32, #tpu.memory_space<vmem>>, vector<1x1x16x128xf32>
    %383 = vector.shape_cast %382 : vector<1x1x16x128xf32> to vector<16x128xf32>
    %c127_i32_110 = arith.constant 127 : i32
    %384 = tpu.dynamic_rotate %383 by %c127_i32_110 dim 1 : vector<16x128xf32>, i32 -> vector<16x128xf32>
    %385 = arith.select %8, %384, %11 : vector<16x128xi1>, vector<16x128xf32>
    %c1_i32_111 = arith.constant 1 : i32
    %386 = tpu.dynamic_rotate %383 by %c1_i32_111 dim 1 : vector<16x128xf32>, i32 -> vector<16x128xf32>
    %387 = arith.select %10, %386, %11 : vector<16x128xi1>, vector<16x128xf32>
    %c5_i32_112 = arith.constant 5 : i32
    %388 = arith.addi %0, %c5_i32_112 : i32
    %c10_i32_113 = arith.constant 10 : i32
    %389 = arith.muli %388, %c10_i32_113 : i32
    %c0_i32_114 = arith.constant 0 : i32
    %390 = arith.addi %389, %c0_i32_114 : i32
    %391 = arith.index_cast %390 : i32 to index
    %392 = memref.load %arg2[%391] : memref<80xf32, #tpu.memory_space<smem>>
    %c1_i32_115 = arith.constant 1 : i32
    %393 = arith.addi %389, %c1_i32_115 : i32
    %394 = arith.index_cast %393 : i32 to index
    %395 = memref.load %arg2[%394] : memref<80xf32, #tpu.memory_space<smem>>
    %c2_i32_116 = arith.constant 2 : i32
    %396 = arith.addi %389, %c2_i32_116 : i32
    %397 = arith.index_cast %396 : i32 to index
    %398 = memref.load %arg2[%397] : memref<80xf32, #tpu.memory_space<smem>>
    %c3_i32_117 = arith.constant 3 : i32
    %399 = arith.addi %389, %c3_i32_117 : i32
    %400 = arith.index_cast %399 : i32 to index
    %401 = memref.load %arg2[%400] : memref<80xf32, #tpu.memory_space<smem>>
    %c4_i32_118 = arith.constant 4 : i32
    %402 = arith.addi %389, %c4_i32_118 : i32
    %403 = arith.index_cast %402 : i32 to index
    %404 = memref.load %arg2[%403] : memref<80xf32, #tpu.memory_space<smem>>
    %c5_i32_119 = arith.constant 5 : i32
    %405 = arith.addi %389, %c5_i32_119 : i32
    %406 = arith.index_cast %405 : i32 to index
    %407 = memref.load %arg2[%406] : memref<80xf32, #tpu.memory_space<smem>>
    %c6_i32_120 = arith.constant 6 : i32
    %408 = arith.addi %389, %c6_i32_120 : i32
    %409 = arith.index_cast %408 : i32 to index
    %410 = memref.load %arg2[%409] : memref<80xf32, #tpu.memory_space<smem>>
    %c7_i32_121 = arith.constant 7 : i32
    %411 = arith.addi %389, %c7_i32_121 : i32
    %412 = arith.index_cast %411 : i32 to index
    %413 = memref.load %arg2[%412] : memref<80xf32, #tpu.memory_space<smem>>
    %c8_i32_122 = arith.constant 8 : i32
    %414 = arith.addi %389, %c8_i32_122 : i32
    %415 = arith.index_cast %414 : i32 to index
    %416 = memref.load %arg2[%415] : memref<80xf32, #tpu.memory_space<smem>>
    %c9_i32_123 = arith.constant 9 : i32
    %417 = arith.addi %389, %c9_i32_123 : i32
    %418 = arith.index_cast %417 : i32 to index
    %419 = memref.load %arg2[%418] : memref<80xf32, #tpu.memory_space<smem>>
    %420 = vector.broadcast %392 : f32 to vector<16x128xf32>
    %421 = arith.mulf %420, %387 : vector<16x128xf32>
    %422 = vector.broadcast %395 : f32 to vector<16x128xf32>
    %423 = arith.mulf %422, %383 : vector<16x128xf32>
    %424 = arith.addf %421, %423 : vector<16x128xf32>
    %425 = vector.broadcast %398 : f32 to vector<16x128xf32>
    %426 = arith.mulf %425, %385 : vector<16x128xf32>
    %427 = arith.addf %424, %426 : vector<16x128xf32>
    %428 = vector.broadcast %401 : f32 to vector<16x128xf32>
    %429 = arith.mulf %428, %387 : vector<16x128xf32>
    %430 = vector.broadcast %404 : f32 to vector<16x128xf32>
    %431 = arith.mulf %430, %383 : vector<16x128xf32>
    %432 = arith.addf %429, %431 : vector<16x128xf32>
    %433 = vector.broadcast %407 : f32 to vector<16x128xf32>
    %434 = arith.mulf %433, %385 : vector<16x128xf32>
    %435 = arith.addf %432, %434 : vector<16x128xf32>
    %436 = vector.broadcast %410 : f32 to vector<16x128xf32>
    %437 = arith.mulf %436, %387 : vector<16x128xf32>
    %438 = vector.broadcast %413 : f32 to vector<16x128xf32>
    %439 = arith.mulf %438, %383 : vector<16x128xf32>
    %440 = arith.addf %437, %439 : vector<16x128xf32>
    %441 = vector.broadcast %416 : f32 to vector<16x128xf32>
    %442 = arith.mulf %441, %385 : vector<16x128xf32>
    %443 = arith.addf %440, %442 : vector<16x128xf32>
    %c1_i32_124 = arith.constant 1 : i32
    %444 = tpu.dynamic_rotate %427 by %c1_i32_124 dim 0 : vector<16x128xf32>, i32 -> vector<16x128xf32>
    %445 = arith.select %6, %444, %11 : vector<16x128xi1>, vector<16x128xf32>
    %446 = arith.addf %435, %445 : vector<16x128xf32>
    %c15_i32_125 = arith.constant 15 : i32
    %447 = tpu.dynamic_rotate %443 by %c15_i32_125 dim 0 : vector<16x128xf32>, i32 -> vector<16x128xf32>
    %448 = arith.select %4, %447, %11 : vector<16x128xi1>, vector<16x128xf32>
    %449 = arith.addf %446, %448 : vector<16x128xf32>
    %450 = arith.addf %383, %449 : vector<16x128xf32>
    %451 = vector.broadcast %419 : f32 to vector<16x128xf32>
    %452 = arith.addf %450, %451 : vector<16x128xf32>
    %c0_126 = arith.constant 0 : index
    %c5_127 = arith.constant 5 : index
    %c0_128 = arith.constant 0 : index
    %c0_129 = arith.constant 0 : index
    %453 = vector.load %arg4[%c0_126, %c5_127, %c0_128, %c0_129] : memref<1x8x16x128xf32, #tpu.memory_space<vmem>>, vector<1x1x16x128xf32>
    %454 = vector.shape_cast %453 : vector<1x1x16x128xf32> to vector<16x128xf32>
    %455 = vector.shape_cast %452 : vector<16x128xf32> to vector<1x1x16x128xf32>
    tpu.vector_store %arg4[%c0_126, %c5_127, %c0_128, %c0_129], %455 {strides = array<i32>} : memref<1x8x16x128xf32, #tpu.memory_space<vmem>>, vector<1x1x16x128xf32>,
    %c0_130 = arith.constant 0 : index
    %c6 = arith.constant 6 : index
    %c0_131 = arith.constant 0 : index
    %c0_132 = arith.constant 0 : index
    %456 = vector.load %arg3[%c0_130, %c6, %c0_131, %c0_132] : memref<1x8x16x128xf32, #tpu.memory_space<vmem>>, vector<1x1x16x128xf32>
    %457 = vector.shape_cast %456 : vector<1x1x16x128xf32> to vector<16x128xf32>
    %c127_i32_133 = arith.constant 127 : i32
    %458 = tpu.dynamic_rotate %457 by %c127_i32_133 dim 1 : vector<16x128xf32>, i32 -> vector<16x128xf32>
    %459 = arith.select %8, %458, %11 : vector<16x128xi1>, vector<16x128xf32>
    %c1_i32_134 = arith.constant 1 : i32
    %460 = tpu.dynamic_rotate %457 by %c1_i32_134 dim 1 : vector<16x128xf32>, i32 -> vector<16x128xf32>
    %461 = arith.select %10, %460, %11 : vector<16x128xi1>, vector<16x128xf32>
    %c6_i32_135 = arith.constant 6 : i32
    %462 = arith.addi %0, %c6_i32_135 : i32
    %c10_i32_136 = arith.constant 10 : i32
    %463 = arith.muli %462, %c10_i32_136 : i32
    %c0_i32_137 = arith.constant 0 : i32
    %464 = arith.addi %463, %c0_i32_137 : i32
    %465 = arith.index_cast %464 : i32 to index
    %466 = memref.load %arg2[%465] : memref<80xf32, #tpu.memory_space<smem>>
    %c1_i32_138 = arith.constant 1 : i32
    %467 = arith.addi %463, %c1_i32_138 : i32
    %468 = arith.index_cast %467 : i32 to index
    %469 = memref.load %arg2[%468] : memref<80xf32, #tpu.memory_space<smem>>
    %c2_i32_139 = arith.constant 2 : i32
    %470 = arith.addi %463, %c2_i32_139 : i32
    %471 = arith.index_cast %470 : i32 to index
    %472 = memref.load %arg2[%471] : memref<80xf32, #tpu.memory_space<smem>>
    %c3_i32_140 = arith.constant 3 : i32
    %473 = arith.addi %463, %c3_i32_140 : i32
    %474 = arith.index_cast %473 : i32 to index
    %475 = memref.load %arg2[%474] : memref<80xf32, #tpu.memory_space<smem>>
    %c4_i32_141 = arith.constant 4 : i32
    %476 = arith.addi %463, %c4_i32_141 : i32
    %477 = arith.index_cast %476 : i32 to index
    %478 = memref.load %arg2[%477] : memref<80xf32, #tpu.memory_space<smem>>
    %c5_i32_142 = arith.constant 5 : i32
    %479 = arith.addi %463, %c5_i32_142 : i32
    %480 = arith.index_cast %479 : i32 to index
    %481 = memref.load %arg2[%480] : memref<80xf32, #tpu.memory_space<smem>>
    %c6_i32_143 = arith.constant 6 : i32
    %482 = arith.addi %463, %c6_i32_143 : i32
    %483 = arith.index_cast %482 : i32 to index
    %484 = memref.load %arg2[%483] : memref<80xf32, #tpu.memory_space<smem>>
    %c7_i32_144 = arith.constant 7 : i32
    %485 = arith.addi %463, %c7_i32_144 : i32
    %486 = arith.index_cast %485 : i32 to index
    %487 = memref.load %arg2[%486] : memref<80xf32, #tpu.memory_space<smem>>
    %c8_i32_145 = arith.constant 8 : i32
    %488 = arith.addi %463, %c8_i32_145 : i32
    %489 = arith.index_cast %488 : i32 to index
    %490 = memref.load %arg2[%489] : memref<80xf32, #tpu.memory_space<smem>>
    %c9_i32_146 = arith.constant 9 : i32
    %491 = arith.addi %463, %c9_i32_146 : i32
    %492 = arith.index_cast %491 : i32 to index
    %493 = memref.load %arg2[%492] : memref<80xf32, #tpu.memory_space<smem>>
    %494 = vector.broadcast %466 : f32 to vector<16x128xf32>
    %495 = arith.mulf %494, %461 : vector<16x128xf32>
    %496 = vector.broadcast %469 : f32 to vector<16x128xf32>
    %497 = arith.mulf %496, %457 : vector<16x128xf32>
    %498 = arith.addf %495, %497 : vector<16x128xf32>
    %499 = vector.broadcast %472 : f32 to vector<16x128xf32>
    %500 = arith.mulf %499, %459 : vector<16x128xf32>
    %501 = arith.addf %498, %500 : vector<16x128xf32>
    %502 = vector.broadcast %475 : f32 to vector<16x128xf32>
    %503 = arith.mulf %502, %461 : vector<16x128xf32>
    %504 = vector.broadcast %478 : f32 to vector<16x128xf32>
    %505 = arith.mulf %504, %457 : vector<16x128xf32>
    %506 = arith.addf %503, %505 : vector<16x128xf32>
    %507 = vector.broadcast %481 : f32 to vector<16x128xf32>
    %508 = arith.mulf %507, %459 : vector<16x128xf32>
    %509 = arith.addf %506, %508 : vector<16x128xf32>
    %510 = vector.broadcast %484 : f32 to vector<16x128xf32>
    %511 = arith.mulf %510, %461 : vector<16x128xf32>
    %512 = vector.broadcast %487 : f32 to vector<16x128xf32>
    %513 = arith.mulf %512, %457 : vector<16x128xf32>
    %514 = arith.addf %511, %513 : vector<16x128xf32>
    %515 = vector.broadcast %490 : f32 to vector<16x128xf32>
    %516 = arith.mulf %515, %459 : vector<16x128xf32>
    %517 = arith.addf %514, %516 : vector<16x128xf32>
    %c1_i32_147 = arith.constant 1 : i32
    %518 = tpu.dynamic_rotate %501 by %c1_i32_147 dim 0 : vector<16x128xf32>, i32 -> vector<16x128xf32>
    %519 = arith.select %6, %518, %11 : vector<16x128xi1>, vector<16x128xf32>
    %520 = arith.addf %509, %519 : vector<16x128xf32>
    %c15_i32_148 = arith.constant 15 : i32
    %521 = tpu.dynamic_rotate %517 by %c15_i32_148 dim 0 : vector<16x128xf32>, i32 -> vector<16x128xf32>
    %522 = arith.select %4, %521, %11 : vector<16x128xi1>, vector<16x128xf32>
    %523 = arith.addf %520, %522 : vector<16x128xf32>
    %524 = arith.addf %457, %523 : vector<16x128xf32>
    %525 = vector.broadcast %493 : f32 to vector<16x128xf32>
    %526 = arith.addf %524, %525 : vector<16x128xf32>
    %c0_149 = arith.constant 0 : index
    %c6_150 = arith.constant 6 : index
    %c0_151 = arith.constant 0 : index
    %c0_152 = arith.constant 0 : index
    %527 = vector.load %arg4[%c0_149, %c6_150, %c0_151, %c0_152] : memref<1x8x16x128xf32, #tpu.memory_space<vmem>>, vector<1x1x16x128xf32>
    %528 = vector.shape_cast %527 : vector<1x1x16x128xf32> to vector<16x128xf32>
    %529 = vector.shape_cast %526 : vector<16x128xf32> to vector<1x1x16x128xf32>
    tpu.vector_store %arg4[%c0_149, %c6_150, %c0_151, %c0_152], %529 {strides = array<i32>} : memref<1x8x16x128xf32, #tpu.memory_space<vmem>>, vector<1x1x16x128xf32>,
    %c0_153 = arith.constant 0 : index
    %c7 = arith.constant 7 : index
    %c0_154 = arith.constant 0 : index
    %c0_155 = arith.constant 0 : index
    %530 = vector.load %arg3[%c0_153, %c7, %c0_154, %c0_155] : memref<1x8x16x128xf32, #tpu.memory_space<vmem>>, vector<1x1x16x128xf32>
    %531 = vector.shape_cast %530 : vector<1x1x16x128xf32> to vector<16x128xf32>
    %c127_i32_156 = arith.constant 127 : i32
    %532 = tpu.dynamic_rotate %531 by %c127_i32_156 dim 1 : vector<16x128xf32>, i32 -> vector<16x128xf32>
    %533 = arith.select %8, %532, %11 : vector<16x128xi1>, vector<16x128xf32>
    %c1_i32_157 = arith.constant 1 : i32
    %534 = tpu.dynamic_rotate %531 by %c1_i32_157 dim 1 : vector<16x128xf32>, i32 -> vector<16x128xf32>
    %535 = arith.select %10, %534, %11 : vector<16x128xi1>, vector<16x128xf32>
    %c7_i32_158 = arith.constant 7 : i32
    %536 = arith.addi %0, %c7_i32_158 : i32
    %c10_i32_159 = arith.constant 10 : i32
    %537 = arith.muli %536, %c10_i32_159 : i32
    %c0_i32_160 = arith.constant 0 : i32
    %538 = arith.addi %537, %c0_i32_160 : i32
    %539 = arith.index_cast %538 : i32 to index
    %540 = memref.load %arg2[%539] : memref<80xf32, #tpu.memory_space<smem>>
    %c1_i32_161 = arith.constant 1 : i32
    %541 = arith.addi %537, %c1_i32_161 : i32
    %542 = arith.index_cast %541 : i32 to index
    %543 = memref.load %arg2[%542] : memref<80xf32, #tpu.memory_space<smem>>
    %c2_i32_162 = arith.constant 2 : i32
    %544 = arith.addi %537, %c2_i32_162 : i32
    %545 = arith.index_cast %544 : i32 to index
    %546 = memref.load %arg2[%545] : memref<80xf32, #tpu.memory_space<smem>>
    %c3_i32_163 = arith.constant 3 : i32
    %547 = arith.addi %537, %c3_i32_163 : i32
    %548 = arith.index_cast %547 : i32 to index
    %549 = memref.load %arg2[%548] : memref<80xf32, #tpu.memory_space<smem>>
    %c4_i32_164 = arith.constant 4 : i32
    %550 = arith.addi %537, %c4_i32_164 : i32
    %551 = arith.index_cast %550 : i32 to index
    %552 = memref.load %arg2[%551] : memref<80xf32, #tpu.memory_space<smem>>
    %c5_i32_165 = arith.constant 5 : i32
    %553 = arith.addi %537, %c5_i32_165 : i32
    %554 = arith.index_cast %553 : i32 to index
    %555 = memref.load %arg2[%554] : memref<80xf32, #tpu.memory_space<smem>>
    %c6_i32_166 = arith.constant 6 : i32
    %556 = arith.addi %537, %c6_i32_166 : i32
    %557 = arith.index_cast %556 : i32 to index
    %558 = memref.load %arg2[%557] : memref<80xf32, #tpu.memory_space<smem>>
    %c7_i32_167 = arith.constant 7 : i32
    %559 = arith.addi %537, %c7_i32_167 : i32
    %560 = arith.index_cast %559 : i32 to index
    %561 = memref.load %arg2[%560] : memref<80xf32, #tpu.memory_space<smem>>
    %c8_i32_168 = arith.constant 8 : i32
    %562 = arith.addi %537, %c8_i32_168 : i32
    %563 = arith.index_cast %562 : i32 to index
    %564 = memref.load %arg2[%563] : memref<80xf32, #tpu.memory_space<smem>>
    %c9_i32_169 = arith.constant 9 : i32
    %565 = arith.addi %537, %c9_i32_169 : i32
    %566 = arith.index_cast %565 : i32 to index
    %567 = memref.load %arg2[%566] : memref<80xf32, #tpu.memory_space<smem>>
    %568 = vector.broadcast %540 : f32 to vector<16x128xf32>
    %569 = arith.mulf %568, %535 : vector<16x128xf32>
    %570 = vector.broadcast %543 : f32 to vector<16x128xf32>
    %571 = arith.mulf %570, %531 : vector<16x128xf32>
    %572 = arith.addf %569, %571 : vector<16x128xf32>
    %573 = vector.broadcast %546 : f32 to vector<16x128xf32>
    %574 = arith.mulf %573, %533 : vector<16x128xf32>
    %575 = arith.addf %572, %574 : vector<16x128xf32>
    %576 = vector.broadcast %549 : f32 to vector<16x128xf32>
    %577 = arith.mulf %576, %535 : vector<16x128xf32>
    %578 = vector.broadcast %552 : f32 to vector<16x128xf32>
    %579 = arith.mulf %578, %531 : vector<16x128xf32>
    %580 = arith.addf %577, %579 : vector<16x128xf32>
    %581 = vector.broadcast %555 : f32 to vector<16x128xf32>
    %582 = arith.mulf %581, %533 : vector<16x128xf32>
    %583 = arith.addf %580, %582 : vector<16x128xf32>
    %584 = vector.broadcast %558 : f32 to vector<16x128xf32>
    %585 = arith.mulf %584, %535 : vector<16x128xf32>
    %586 = vector.broadcast %561 : f32 to vector<16x128xf32>
    %587 = arith.mulf %586, %531 : vector<16x128xf32>
    %588 = arith.addf %585, %587 : vector<16x128xf32>
    %589 = vector.broadcast %564 : f32 to vector<16x128xf32>
    %590 = arith.mulf %589, %533 : vector<16x128xf32>
    %591 = arith.addf %588, %590 : vector<16x128xf32>
    %c1_i32_170 = arith.constant 1 : i32
    %592 = tpu.dynamic_rotate %575 by %c1_i32_170 dim 0 : vector<16x128xf32>, i32 -> vector<16x128xf32>
    %593 = arith.select %6, %592, %11 : vector<16x128xi1>, vector<16x128xf32>
    %594 = arith.addf %583, %593 : vector<16x128xf32>
    %c15_i32_171 = arith.constant 15 : i32
    %595 = tpu.dynamic_rotate %591 by %c15_i32_171 dim 0 : vector<16x128xf32>, i32 -> vector<16x128xf32>
    %596 = arith.select %4, %595, %11 : vector<16x128xi1>, vector<16x128xf32>
    %597 = arith.addf %594, %596 : vector<16x128xf32>
    %598 = arith.addf %531, %597 : vector<16x128xf32>
    %599 = vector.broadcast %567 : f32 to vector<16x128xf32>
    %600 = arith.addf %598, %599 : vector<16x128xf32>
    %c0_172 = arith.constant 0 : index
    %c7_173 = arith.constant 7 : index
    %c0_174 = arith.constant 0 : index
    %c0_175 = arith.constant 0 : index
    %601 = vector.load %arg4[%c0_172, %c7_173, %c0_174, %c0_175] : memref<1x8x16x128xf32, #tpu.memory_space<vmem>>, vector<1x1x16x128xf32>
    %602 = vector.shape_cast %601 : vector<1x1x16x128xf32> to vector<16x128xf32>
    %603 = vector.shape_cast %600 : vector<16x128xf32> to vector<1x1x16x128xf32>
    tpu.vector_store %arg4[%c0_172, %c7_173, %c0_174, %c0_175], %603 {strides = array<i32>} : memref<1x8x16x128xf32, #tpu.memory_space<vmem>>, vector<1x1x16x128xf32>,
    return
  }
  func.func @transform_0(%arg0: i32, %arg1: i32) -> i32 {
    %c0_i32 = arith.constant 0 : i32
    %c0_i32_0 = arith.constant 0 : i32
    return %c0_i32 : i32
  }
  func.func @transform_1(%arg0: i32, %arg1: i32) -> (i32, i32, i32, i32) {
    %c0_i32 = arith.constant 0 : i32
    %c0_i32_0 = arith.constant 0 : i32
    %c0_i32_1 = arith.constant 0 : i32
    return %arg0, %arg1, %c0_i32, %c0_i32_0 : i32, i32, i32, i32
  }
  func.func @transform_2(%arg0: i32, %arg1: i32) -> (i32, i32, i32, i32) {
    %c0_i32 = arith.constant 0 : i32
    %c0_i32_0 = arith.constant 0 : i32
    %c0_i32_1 = arith.constant 0 : i32
    return %arg0, %arg1, %c0_i32, %c0_i32_0 : i32, i32, i32, i32
  }
}

</mosaic_0001>

<bundles_post_ra>
// kernel: tpu_custom_call.1
= control target key start
LH: loop header
LB: loop body
LE: loop exit
PB: predicated region body
PF: predicated region fallthrough
CT: control target
= control target key end

     0   :  { %s2780_s0 = inlined_call_operand.hbm [shape: f32[80], index: 0, kind: input, shape index: {}]   ;;  %s2781_s1 = inlined_call_operand.hbm [shape: f32[2,8,16,128], index: 1, kind: input, shape index: {}]   ;;  %s2782_s2 = inlined_call_operand.hbm [shape: f32[2,8,16,128], index: 2, kind: output, shape index: {}]  }
   0x1   :  { %2872 = sst [smem:[#allocation71_spill]] %s2780_s0 }
   0x2   :  { %2873 = sst [smem:[#allocation72_spill]] %s2781_s1 }
   0x3   :  { %2874 = sst [smem:[#allocation73_spill]] %s2782_s2 }
   0x4   :  { %7 = vsyncpa [#allocation5], 0 }
   0x5   :  { %8 = vsyncpa [#allocation3], 0 }
   0x6   :  { %10 = vsyncpa [#allocation3 + $0x1], 0 }
   0x7   :  { %11 = vsyncpa [#allocation4], 0 }
   0x8   :  { %13 = vsyncpa [#allocation4 + $0x1], 0  ;;  %s1484_s9 = smov 0   ;;  %s1486_s10 = smov 0  }
   0x9   :  { %s1488_s11 = smov 0   ;;  %s1490_s12 = smov 0  }
   0xa   :  { %s1492_s13 = smov 0   ;;  %s1494_s14 = smov 0  }
   0xb LB: > { %2875 = sst [smem:[#allocation11_spill]] %s1438_s9  ;;  %s1114_s15 = sadd.s32 4294967295, %s1458_s14   ;;  %s1458_s14 = sphi %s1494_s14, %s19_s14   ;;  %s1454_s13 = sphi %s1492_s13, %s3129_s13   ;;  %s1450_s12 = sphi %s1490_s12, %s3128_s12   ;;  %s1446_s11 = sphi %s1488_s11, %s3127_s11   ;;  %s1442_s10 = sphi %s1486_s10, %s3126_s10   ;;  %s1438_s9 = sphi %s1484_s9, %s3125_s9  }
   0xc   : > { %2876 = sst [smem:[#allocation12_spill]] %s1442_s10  ;;  %s1115_s16 = sadd.s32 4294967294, %s1458_s14  }
   0xd   : > { %2877 = sst [smem:[#allocation13_spill]] %s1446_s11  ;;  %s61_s17 = sadd.s32 1, %s1446_s11 }
   0xe   : > { %2878 = sst [smem:[#allocation14_spill]] %s1450_s12  ;;  %p68_p0 = scmp.ne.s32.totalorder %s1446_s11, %s1442_s10 }
   0xf   : > { %2879 = sst [smem:[#allocation15_spill]] %s1454_s13  ;;  %p69_p1 = scmp.eq.s32.totalorder %s1458_s14, 0 }
  0x10   : > { %2880 = sst [smem:[#allocation16_spill]] %s1458_s14  ;;  %p74_p2 = scmp.ne.s32.totalorder %s1442_s10, %s1438_s9 }
  0x11   : > { %p1522_p3 = scmp.eq.s32.totalorder %s1114_s15, 0  ;;  %p100_p4 = scmp.eq.s32.totalorder %s1114_s15, 1 }
  0x12   : > { %p70_p5 = por %p69_p1, %p68_p0  ;;  %p106_p6 = scmp.eq.s32.totalorder %s1115_s16, 1 }
  0x13   : > { %s2881_s18 = scalar_select %p1522_p3, 1, 0 }
  0x14   : > { %p1528_p7 = por %p1522_p3, %p74_p2  ;;  %p1532_p8 = por %p100_p4, %p68_p0 }
  0x15   : > { %p1536_p9 = por %p106_p6, %p74_p2  ;;  %p1116_p10 = scmp.ge.s32.totalorder %s1458_s14, 1 }
  0x16   : > { %s2882_s19 = scalar_select %p1528_p7, 1, 0 }
  0x17   : > { %s2883_s20 = scalar_select %p1532_p8, 1, 0 }
  0x18   : > { %s2885_s21 = scalar_select %p1536_p9, 1, 0 }
  0x19   : > { %2884 = sst [smem:[#allocation17_spill]] %s2883_s20  ;;  %p113_p11 = scmp.lt.s32.totalorder %s1458_s14, 3 }
  0x1a   : > { %2886 = sst [smem:[#allocation18_spill]] %s2885_s21  ;;  %p1261_p1 = scmp.lt.s32.totalorder %s1458_s14, 2 }
  0x1b   : > { %p1543_p13 = pnand %p1116_p10, %p113_p11  ;;  %s135_s23 = sand.u32 1, %s1446_s11  }
  0x1c   : > { %p1551_p0 = pnand %p1261_p1, %p70_p5  ;;  %s31_s25 = sadd.s32 1, %s1454_s13 }
  0x1d   : > { %p1248_p7 = pneg %p1543_p13  ;;  %s1119_s26 = sshll.u32 %s135_s23, 7 }
  0x1e   : > { %p33_p4 = scmp.ge.s32.totalorder %s31_s25, 2  ;;  %s2889_s0 = sld [smem:[#allocation71_spill]] }
  0x1f   : > { %p1249_p2 = pnand %p1248_p7, %p1522_p3 }
  0x21   : > { %p1331_p10 = pneg %p1249_p2 }
  0x24   : > { %s1329_s29 = scalar_lea.hbm %s2889_s0, 16 }
  0x25   : > { %p1330_p6 = scmp.ne.s32.totalorder %s2889_s0, %s1329_s29  ;;  %p1336_p5 = scmp.lt.u32.totalorder %s1329_s29, %s2889_s0 }
  0x27   : > { %p1332_p11 = pnand %p1331_p10, %p1330_p6 }
  0x29   : > { %p1333_p12 = pneg %p1332_p11 }
  0x2b   : > { %p1338_p1 = pnand %p1336_p5, %p1333_p12 }
  0x2d   : > { %1341 = shalt.err (!%p1338_p1)
}
  0x2e   : > { %s1460_s6 = smov [#allocation2]   ;;  %s3131_s25 = smov (%p33_p4, %s31_s25), 0 }
  0x2f   : > { %1251 = dma.hbm_to_smem (!%p1249_p2), %s2889_s0, 16, %s1460_s6, [#allocation5]  }
  0x30   : > { %2890 = sst [smem:[#allocation19_spill]] %s3131_s25  ;;  %s1238_s15 = sshll.u32 %s1454_s13, 11 }
  0x31   : > { %s56_s16 = ssub.s32 %s1454_s13, %s3131_s25  ;;  %s2891_s1 = sld [smem:[#allocation72_spill]] }
  0x32   : > { %p59_p7 = scmp.eq.s32.totalorder %s56_s16, 0  ;;  %s139_s30 = scalar_lea.vmem [#allocation6], %s1119_s26 }
  0x33   : > { %s149_s3 = sshll.u32 %s139_s30, 4  ;;  %s1587_s5 = scalar_lea.sflag [#allocation3], %s135_s23  ;;  %s1580_s3 = int_to_ptr.vmem [resolvable:$true] %s149_s3 }
  0x34   : > { %s1585_s4 = scalar_select %p59_p7, %s1446_s11, %s61_s17  }
  0x35   : > { %p1344_p2 = pneg %p1551_p0 }
  0x36   : > { %2892 = sst [smem:[#allocation20_spill]] %s1585_s4 }
  0x37   : > { %s1578_s29 = scalar_lea.hbm %s2891_s1, %s1238_s15  ;;  %s1347_s26 = scalar_lea.hbm %s2891_s1, 4096 }
  0x38   : > { %s1342_s6 = scalar_lea.hbm %s1578_s29, 2048  ;;  %p1348_p10 = scmp.lt.u32.totalorder %s1578_s29, %s2891_s1 }
  0x39   : > { %p1343_p12 = scmp.ne.s32.totalorder %s1578_s29, %s1342_s6  ;;  %p1349_p11 = scmp.lt.u32.totalorder %s1347_s26, %s1342_s6 }
  0x3a   : > { %p1351_p1 = scmp.lt.u32.totalorder %s1342_s6, %s1578_s29 }
  0x3b   : > { %p1345_p4 = pnand %p1344_p2, %p1343_p12  ;;  %p1350_p5 = por %p1349_p11, %p1348_p10 }
  0x3d   : > { %p1346_p6 = pneg %p1345_p4  ;;  %p1352_p7 = por %p1351_p1, %p1350_p5 }
  0x3f   : > { %p1353_p9 = pnand %p1352_p7, %p1346_p6 }
  0x41   : > { %1356 = shalt.err (!%p1353_p9)
}
  0x42   : > { %s1357_s17 = scalar_lea.vmem %s1580_s3, 2048  ;;  %s1461_s23 = smov [#allocation6]  }
  0x43   : > { %p1358_p12 = scmp.ne.s32.totalorder %s1580_s3, %s1357_s17  ;;  %s1362_s27 = sshll.u32 %s1461_s23, 4  ;;  %s1363_s27 = int_to_ptr.vmem [resolvable:$false] %s1362_s27 }
  0x44   : > { %s1364_s28 = scalar_lea.vmem %s1363_s27, 4096  ;;  %p1365_p3 = scmp.lt.s32.totalorder %s1580_s3, %s1363_s27 }
  0x45   : > { %p1360_p4 = pnand %p1358_p12, %p1344_p2  ;;  %p1366_p10 = scmp.lt.s32.totalorder %s1364_s28, %s1357_s17 }
  0x47   : > { %p1361_p8 = pneg %p1360_p4  ;;  %p1367_p11 = por %p1366_p10, %p1365_p3 }
  0x49   : > { %p1368_p5 = pnand %p1367_p11, %p1361_p8 }
  0x4b   : > { %1371 = shalt.err (!%p1368_p5)
}
  0x4c   : > { %s1462_s30 = smov 128   ;;  %s1463_s6 = smov 8  }
  0x4d   : > { %1255 = dma.hbm_to_vmem [thread:$0]  (!%p1551_p0), %s1578_s29, 2048, %s1580_s3, %s1587_s5, %s1462_s30, %s1462_s30, %s1463_s6  }
  0x4e   : > { %161 = sbr.rel (%p1543_p13) target bundleno = 352 (0x160), region = 28 }
  0x55   : > { %p2893_p9 = scmp.ne.s32.totalorder %s2881_s18, 0 }
  0x57   : > { %1425 = dma.done.wait (%p2893_p9), [#allocation5], 16  }
  0x58   : > { %1427 = vsyncadd (%p2893_p9), [#allocation5], 4294967280  ;;  %s1622_s7 = sand.u32 1, %s1442_s10   ;;  %p2896_p3 = scmp.ne.s32.totalorder %s2882_s19, 0 }
  0x59   : > { %2894 = sst [smem:[#allocation21_spill]] %s1622_s7  ;;  %s2787_s8 = sshll.u32 %s1622_s7, 7 }
  0x5a   : > { %s168_s26 = scalar_lea.sflag [#allocation3], %s1622_s7  ;;  %s1628_s24 = scalar_lea.vmem [#allocation6], %s2787_s8 }
  0x5b   : > { %2895 = sst [smem:[#allocation22_spill]] %s1628_s24 }
  0x5c   : > { %1429 = dma.done.wait (%p2896_p3), %s168_s26, 2048  }
  0x5d   : > { %1431 = vsyncadd (%p2896_p3), %s168_s26, 4294965248 }
  0x5e   : > { %176 = sfence }
  0x5f   : > { %v1635_v0 = vld [vmem:[%s1628_s24 + $0x10] sm:$0xff]  ;;  %v1638_v1 = vld [vmem:[%s1628_s24] sm:$0xff]  ;;  %s1464_s18 = smov 1   ;;  %v1643_v2 = vld [vmem:[%s1628_s24 + $0x18] sm:$0xff]  ;;  %s1465_s19 = smov 127   ;;  %v196_v16 = vlaneseq }
  0x60   : > { %2897 = vst [vmem:[#allocation23_spill] sm:$0xff] %v1635_v0  ;;  %2898 = vst [vmem:[#allocation24_spill] sm:$0xff] %v1638_v1  ;;  %314 = vrot.lane.b32.xlu1 %v1635_v0, %s1464_s18  ;;  %215 = vrot.lane.b32.xlu0 %v1638_v1, %s1464_s18  ;;  %v1646_v3 = vld [vmem:[%s1628_s24 + $0x8] sm:$0xff]  ;;  %v1654_v5 = vld [vmem:[%s1628_s24 + $0x20] sm:$0xff]  ;;  %s1714_s22 = sld [smem:[#allocation2 + $0xa]]  ;;  %s1716_s29 = sld [smem:[#allocation2 + $0xb]] }
  0x61   : > { %2899 = vst [vmem:[#allocation25_spill] sm:$0xff] %v1643_v2  ;;  %2900 = vst [vmem:[#allocation26_spill] sm:$0xff] %v1646_v3  ;;  %v1651_v4 = vld [vmem:[%s1628_s24 + $0x28] sm:$0xff]  ;;  %v1659_v6 = vld [vmem:[%s1628_s24 + $0x38] sm:$0xff]  ;;  %s1718_s3 = sld [smem:[#allocation2 + $0xd]]  ;;  %s1720_s5 = sld [smem:[#allocation2 + $0xe]] }
  0x62   : > { %2901 = vst [vmem:[#allocation27_spill] sm:$0xff] %v1651_v4  ;;  %2902 = vst [vmem:[#allocation28_spill] sm:$0xff] %v1654_v5  ;;  %v1662_v7 = vld [vmem:[%s1628_s24 + $0x30] sm:$0xff]  ;;  %v1667_v8 = vld [vmem:[%s1628_s24 + $0x48] sm:$0xff]  ;;  %s1722_s15 = sld [smem:[#allocation2 + $0x10]]  ;;  %s1724_s16 = sld [smem:[#allocation2 + $0x11]] }
  0x63   : > { %v1670_v9 = vld [vmem:[%s1628_s24 + $0x40] sm:$0xff]  ;;  %v1675_v10 = vld [vmem:[%s1628_s24 + $0x58] sm:$0xff]  ;;  %v1678_v11 = vld [vmem:[%s1628_s24 + $0x50] sm:$0xff]  ;;  %s1726_s17 = sld [smem:[#allocation2]]  ;;  %s1728_s23 = sld [smem:[#allocation2 + $0x1]]  ;;  %v1769_v19 = vand.u32 127, %v196_v16 }
  0x64   : > { %316 = vrot.lane.b32.xlu1 %v1643_v2, %s1464_s18  ;;  %217 = vrot.lane.b32.xlu0 %v1646_v3, %s1464_s18  ;;  %v1683_v12 = vld [vmem:[%s1628_s24 + $0x68] sm:$0xff]  ;;  %v1686_v13 = vld [vmem:[%s1628_s24 + $0x60] sm:$0xff]  ;;  %s1730_s27 = sld [smem:[#allocation2 + $0x3]]  ;;  %s1732_s28 = sld [smem:[#allocation2 + $0x4]]  ;;  %v2032_v28 = vshrl.u32 %v196_v16, 7 }
  0x65   : > { %v1691_v14 = vld [vmem:[%s1628_s24 + $0x78] sm:$0xff]  ;;  %v1694_v15 = vld [vmem:[%s1628_s24 + $0x70] sm:$0xff]  ;;  %s1734_s30 = sld [smem:[#allocation2 + $0x6]]  ;;  %s1736_s6 = sld [smem:[#allocation2 + $0x7]]  ;;  %vm206_vm0 = vcmp.ge.s32.totalorder %v1769_v19, 1  ;;  %vm205_vm1 = vcmp.lt.s32.totalorder %v1769_v19, 127 }
  0x66   : > { %s1738_s26 = sld [smem:[#allocation2 + $0x14]]  ;;  %s1744_s8 = sld [smem:[#allocation2 + $0x18]]  ;;  %v344_v17 = vstv %s1716_s29  ;;  %vm282_vm2 = vcmp.lt.s32.totalorder %v2032_v28, 1  ;;  %vm203_vm3 = vcmp.ge.s32.totalorder %v2032_v28, 1  ;;  %vm291_vm4 = vcmp.lt.s32.totalorder %v2032_v28, 7 }
  0x67   : > { %s1746_s0 = sld [smem:[#allocation2 + $0x1a]]  ;;  %s1748_s1 = sld [smem:[#allocation2 + $0x1b]]  ;;  %v357_v18 = vstv %s1720_s5  ;;  %v1777_v21 = vmul.f32 %v1635_v0, %v344_v17  ;;  %v1791_v27 = vmul.f32 %v1643_v2, %v344_v17 }
  0x68   : > { %415 = vrot.lane.b32.xlu1 %v1651_v4, %s1464_s18  ;;  %413 = vrot.lane.b32.xlu0 %v1654_v5, %s1464_s18  ;;  %2903 = sst [smem:[#allocation29_spill]] %s1722_s15  ;;  %s1750_s25 = sld [smem:[#allocation2 + $0x1e]]  ;;  %v370_v23 = vstv %s1724_s16  ;;  %v1786_v24 = vmul.f32 %v1635_v0, %v357_v18  ;;  %v1801_v31 = vmul.f32 %v1643_v2, %v357_v18 }
  0x69   : > { %2904 = sst [smem:[#allocation30_spill]] %s1726_s17  ;;  %s1752_s13 = sld [smem:[#allocation2 + $0x1f]]  ;;  %v244_v25 = vstv %s1728_s23  ;;  %v1808_v32 = vmul.f32 %v1635_v0, %v370_v23  ;;  %v1812_v34 = vmul.f32 %v1643_v2, %v370_v23 }
  0x6a   : > { %2905 = sst [smem:[#allocation31_spill]] %s1730_s27  ;;  %s1754_s4 = sld [smem:[#allocation2 + $0x21]]  ;;  %v257_v26 = vstv %s1732_s28  ;;  %v1821_v37 = vmul.f32 %v244_v25, %v1638_v1  ;;  %v1827_v39 = vmul.f32 %v244_v25, %v1646_v3 }
  0x6b   : > { %2906 = sst [smem:[#allocation32_spill]] %s1734_s30  ;;  %s1756_s11 = sld [smem:[#allocation2 + $0x22]]  ;;  %v270_v30 = vstv %s1736_s6  ;;  %v1824_v38 = vmul.f32 %v257_v26, %v1638_v1  ;;  %v1837_v41 = vmul.f32 %v257_v26, %v1646_v3 }
  0x6c   : > { %514 = vrot.lane.b32.xlu1 %v1659_v6, %s1464_s18  ;;  %512 = vrot.lane.b32.xlu0 %v1662_v7, %s1464_s18  ;;  %2907 = sst [smem:[#allocation33_spill]] %s1738_s26  ;;  %s1759_s10 = sld [smem:[#allocation2 + $0x24]]  ;;  %v1834_v40 = vmul.f32 %v270_v30, %v1638_v1  ;;  %v456_v43 = vstv %s1744_s8  ;;  %v1846_v44 = vmul.f32 %v270_v30, %v1646_v3 }
  0x6d   : > { %2909 = sst [smem:[#allocation35_spill]] %s1746_s0  ;;  %s1761_s14 = sld [smem:[#allocation2 + $0x25]]  ;;  %v469_v47 = vstv %s1748_s1  ;;  %v1868_v52 = vmul.f32 %v1651_v4, %v456_v43  ;;  %v1871_v53 = vmul.f32 %v1654_v5, %v456_v43 }
  0x6e   : > { %2910 = sst [smem:[#allocation36_spill]] %s1750_s25  ;;  %s1764_s21 = sld [smem:[#allocation2 + $0x28]]  ;;  %v1880_v56 = vmul.f32 %v1651_v4, %v469_v47  ;;  %v1883_v57 = vmul.f32 %v1654_v5, %v469_v47 }
  0x6f   : > { %s1766_s9 = sld [smem:[#allocation2 + $0x29]]  ;;  %s1771_s2 = sld [smem:[#allocation2 + $0x2b]]  ;;  %v542_v50 = vstv %s1752_s13 }
  0x70   : > { %613 = vrot.lane.b32.xlu1 %v1667_v8, %s1464_s18  ;;  %611 = vrot.lane.b32.xlu0 %v1670_v9, %s1464_s18  ;;  %2911 = sst [smem:[#allocation37_spill]] %s1754_s4  ;;  %s1781_s5 = sld [smem:[#allocation2 + $0x2e]]  ;;  %v1892_v60 = vmul.f32 %v1659_v6, %v542_v50  ;;  %v1899_v63 = vmul.f32 %v1662_v7, %v542_v50 }
  0x71   : > { %s1773_s29 = sld [smem:[#allocation2 + $0x2c]]  ;;  %s1783_s20 = sld [smem:[#allocation2 + $0x2f]]  ;;  %v555_v51 = vstv %s1756_s11 }
  0x72   : > { %2912 = sst [smem:[#allocation38_spill]] %s1759_s10  ;;  %s1793_s12 = sld [smem:[#allocation2 + $0x32]]  ;;  %v1895_v61 = vmul.f32 %v1659_v6, %v555_v51  ;;  %v1909_v18 = vmul.f32 %v1662_v7, %v555_v51 }
  0x73   : > { %s1795_s24 = sld [smem:[#allocation2 + $0x33]]  ;;  %s1803_s16 = sld [smem:[#allocation2 + $0x35]]  ;;  %v568_v55 = vstv %s1761_s14 }
  0x74   : > { %712 = vrot.lane.b32.xlu1 %v1675_v10, %s1464_s18  ;;  %710 = vrot.lane.b32.xlu0 %v1678_v11, %s1464_s18  ;;  %2913 = sst [smem:[#allocation39_spill]] %s1764_s21  ;;  %s1815_s23 = sld [smem:[#allocation2 + $0x38]]  ;;  %v1906_v17 = vmul.f32 %v1659_v6, %v568_v55  ;;  %v1918_v26 = vmul.f32 %v1662_v7, %v568_v55 }
  0x75   : > { %2914 = sst [smem:[#allocation40_spill]] %s1771_s2  ;;  %s1805_s7 = sld [smem:[#allocation2 + $0x36]]  ;;  %v641_v59 = vstv %s1766_s9 }
  0x76   : > { %2915 = sst [smem:[#allocation41_spill]] %s1781_s5  ;;  %s1817_s28 = sld [smem:[#allocation2 + $0x39]]  ;;  %v1921_v30 = vmul.f32 %v1667_v8, %v641_v59  ;;  %v1931_v47 = vmul.f32 %v1670_v9, %v641_v59 }
  0x77   : > { %s1829_s6 = sld [smem:[#allocation2 + $0x3c]]  ;;  %s1841_s30 = sld [smem:[#allocation2 + $0x3f]]  ;;  %v654_v25 = vstv %s1773_s29 }
  0x78   : > { %811 = vrot.lane.b32.xlu1 %v1683_v12, %s1464_s18  ;;  %809 = vrot.lane.b32.xlu0 %v1686_v13, %s1464_s18  ;;  %2916 = sst [smem:[#allocation42_spill]] %s1793_s12  ;;  %s1843_s27 = sld [smem:[#allocation2 + $0x40]]  ;;  %v1943_v55 = vmul.f32 %v1670_v9, %v654_v25 }
  0x79   : > { %2917 = sst [smem:[#allocation43_spill]] %s1803_s16  ;;  %s1855_s15 = sld [smem:[#allocation2 + $0x43]]  ;;  %v740_v50 = vstv %s1795_s24 }
  0x7a   : > { %2918 = sst [smem:[#allocation44_spill]] %s1815_s23  ;;  %s1853_s17 = sld [smem:[#allocation2 + $0x42]]  ;;  %v1971_v54 = vmul.f32 %v1678_v11, %v740_v50 }
  0x7b   : > { %s1863_s8 = sld [smem:[#allocation2 + $0x46]]  ;;  %s1865_s26 = sld [smem:[#allocation2 + $0x47]]  ;;  %v753_v51 = vstv %s1805_s7 }
  0x7c   : > { %910 = vrot.lane.b32.xlu1 %v1691_v14, %s1464_s18  ;;  %908 = vrot.lane.b32.xlu0 %v1694_v15, %s1464_s18  ;;  %s1740_s18 = sld [smem:[#allocation2 + $0x15]]  ;;  %s1875_s1 = sld [smem:[#allocation2 + $0x49]]  ;;  %v766_v23 = vstv %s1817_s28 }
  0x7d   : > { %2919 = sst [smem:[#allocation45_spill]] %s1829_s6  ;;  %s1877_s0 = sld [smem:[#allocation2 + $0x4a]] }
  0x7e   : > { %s1887_s11 = sld [smem:[#allocation2 + $0x4c]]  ;;  %s1889_s13 = sld [smem:[#allocation2 + $0x4d]] }
  0x7f   : > { %s1901_s14 = sld [smem:[#allocation2 + $0x2]]  ;;  %s1903_s9 = sld [smem:[#allocation2 + $0x5]] }
  0x80   : > { %211 = vrot.lane.b32.xlu1 %v1646_v3, %s1465_s19  ;;  %209 = vrot.lane.b32.xlu0 %v1638_v1, %s1465_s19  ;;  %2920 = sst [smem:[#allocation46_spill]] %s1853_s17  ;;  %s1913_s4 = sld [smem:[#allocation2 + $0x8]]  ;;  %v2949_v1 = vstv %s1718_s3 }
  0x81   : > { %2921 = sst [smem:[#allocation47_spill]] %s1863_s8  ;;  %s1915_s10 = sld [smem:[#allocation2 + $0x9]]  ;;  %v938_v42 = vstv %s1865_s26 }
  0x82   : > { %v443_v35 = vstv %s1740_s18  ;;  %s1831_s18 = sld [smem:[#allocation2 + $0x3d]]  ;;  %2922 = sst [smem:[#allocation48_spill]] %s1875_s1 }
  0x83   : > { %v1849_v45 = vmul.f32 %v1651_v4, %v443_v35  ;;  %v1859_v49 = vmul.f32 %v1654_v5, %v443_v35  ;;  %s1925_s25 = sld [smem:[#allocation2 + $0xc]]  ;;  %s1935_s29 = sld [smem:[#allocation2 + $0x12]]  ;;  %v1967_v35 = vmul.f32 %v1675_v10, %v753_v51  ;;  %v951_v36 = vstv %s1877_s0 }
  0x84   : > { %310 = vrot.lane.b32.xlu1 %v1643_v2, %s1465_s19  ;;  %308 = vrot.lane.b32.xlu0 %v1635_v0, %s1465_s19  ;;  %2923 = sst [smem:[#allocation49_spill]] %s1887_s11  ;;  %s1937_s21 = sld [smem:[#allocation2 + $0x16]]  ;;  %v964_v33 = vstv %s1889_s13  ;;  %v2056_v29 = vmul.f32 %v1694_v15, %v951_v36 }
  0x85   : > { %s1949_s5 = sld [smem:[#allocation2 + $0x1c]]  ;;  %s1959_s7 = sld [smem:[#allocation2 + $0x13]]  ;;  %v2053_v16 = vmul.f32 %v1691_v14, %v964_v33  ;;  %v2059_v46 = vmul.f32 %v1694_v15, %v964_v33  ;;  %v2071_v33 = vadd.s32 8, %v2032_v28 }
  0x86   : > { %2924 = sst [smem:[#allocation50_spill]] %s1913_s4  ;;  %s1961_s24 = sld [smem:[#allocation2 + $0x20]]  ;;  %2938 = vst [vmem:[#allocation64_spill] sm:$0xff] %v2056_v29  ;;  %v2948_v29 = vstv %s1714_s22 }
  0x87   : > { %2925 = sst [smem:[#allocation51_spill]] %s1915_s10  ;;  %s1973_s28 = sld [smem:[#allocation2 + $0x23]]  ;;  %2937 = vst [vmem:[#allocation63_spill] sm:$0xff] %v2053_v16  ;;  %2939 = vst [vmem:[#allocation65_spill] sm:$0xff] %v2059_v46 }
  0x88   : > { %409 = vrot.lane.b32.xlu1 %v1651_v4, %s1465_s19  ;;  %407 = vrot.lane.b32.xlu0 %v1654_v5, %s1465_s19  ;;  %v839_v58 = vstv %s1831_s18  ;;  %s1975_s18 = sld [smem:[#allocation2 + $0x26]]  ;;  %s1986_s23 = sld [smem:[#allocation2 + $0x1d]]  ;;  %2941 = vst [vmem:[#allocation67_spill] sm:$0xff] %v2071_v33 }
  0x89   : > { %s1988_s16 = sld [smem:[#allocation2 + $0x2a]]  ;;  %v1994_v48 = vmul.f32 %v1683_v12, %v839_v58  ;;  %s1998_s12 = sld [smem:[#allocation2 + $0x2d]]  ;;  %v2004_v62 = vmul.f32 %v1686_v13, %v839_v58 }
  0x8a   : > { %2926 = sst [smem:[#allocation52_spill]] %s1937_s21  ;;  %s2000_s2 = sld [smem:[#allocation2 + $0x30]] }
  0x8b   : > { %2927 = sst [smem:[#allocation53_spill]] %s1959_s7  ;;  %2931 = vst [vmem:[#allocation57_spill] sm:$0xff] %v2004_v62  ;;  %s2022_s17 = sld [smem:[#allocation2 + $0x3a]] }
  0x8c   : > { %508 = vrot.lane.b32.xlu1 %v1659_v6, %s1465_s19  ;;  %506 = vrot.lane.b32.xlu0 %v1662_v7, %s1465_s19  ;;  %v667_v6 = vstv %s1783_s20  ;;  %v1940_v7 = vmul.f32 %v1667_v8, %v654_v25  ;;  %s1947_s20 = sld [smem:[#allocation2 + $0x19]]  ;;  %v1964_v25 = vmul.f32 %v1675_v10, %v740_v50  ;;  %v1991_v50 = vmul.f32 %v1678_v11, %v766_v23  ;;  %s2010_s6 = sld [smem:[#allocation2 + $0x34]] }
  0x8d   : > { %v1952_v59 = vmul.f32 %v1667_v8, %v667_v6  ;;  %v1955_v43 = vmul.f32 %v1670_v9, %v667_v6  ;;  %v1982_v6 = vmul.f32 %v1678_v11, %v753_v51  ;;  %s2034_s0 = sld [smem:[#allocation2 + $0x31]]  ;;  %s2036_s26 = sld [smem:[#allocation2 + $0x3e]] }
  0x8e   : > { %2928 = sst [smem:[#allocation54_spill]] %s1975_s18  ;;  %s2048_s13 = sld [smem:[#allocation2 + $0x41]] }
  0x8f   : > { %2929 = sst [smem:[#allocation55_spill]] %s1986_s23  ;;  %s2050_s1 = sld [smem:[#allocation2 + $0x44]] }
  0x90   : > { %607 = vrot.lane.b32.xlu1 %v1667_v8, %s1465_s19  ;;  %605 = vrot.lane.b32.xlu0 %v1670_v9, %s1465_s19  ;;  %v1979_v9 = vmul.f32 %v1675_v10, %v766_v23  ;;  %v852_v8 = vstv %s1843_s27  ;;  %2930 = sst [smem:[#allocation56_spill]] %s1988_s16  ;;  %s2062_s11 = sld [smem:[#allocation2 + $0x3b]] }
  0x91   : > { %s2008_s27 = sld [smem:[#allocation2 + $0x27]]  ;;  %v2016_v23 = vmul.f32 %v1686_v13, %v852_v8  ;;  %s2068_s8 = sld [smem:[#allocation2 + $0x48]] }
  0x92   : > { %s2076_s4 = sld [smem:[#allocation2 + $0x4b]]  ;;  %s2078_s10 = sld [smem:[#allocation2 + $0x4e]] }
  0x93   : > { %2932 = vst [vmem:[#allocation58_spill] sm:$0xff] %v2016_v23  ;;  %s2088_s21 = sld [smem:[#allocation2 + $0x45]]  ;;  %s2944_s7 = sld [smem:[#allocation29_spill]]  ;;  %v2956_v23 = vstv %s1718_s3 }
  0x94   : > { %706 = vrot.lane.b32.xlu1 %v1675_v10, %s1465_s19  ;;  %704 = vrot.lane.b32.xlu0 %v1678_v11, %s1465_s19  ;;  %v865_v10 = vstv %s1855_s15  ;;  %v2013_v11 = vmul.f32 %v1683_v12, %v852_v8  ;;  %s2020_s15 = sld [smem:[#allocation2 + $0x37]]  ;;  %v2039_v8 = vmul.f32 %v1691_v14, %v938_v42  ;;  %s2945_s23 = sld [smem:[#allocation30_spill]] }
  0x95   : > { %v2025_v58 = vmul.f32 %v1683_v12, %v865_v10  ;;  %v2028_v51 = vmul.f32 %v1686_v13, %v865_v10  ;;  %v2046_v10 = vmul.f32 %v1694_v15, %v938_v42  ;;  %s2946_s16 = sld [smem:[#allocation31_spill]]  ;;  %s2947_s18 = sld [smem:[#allocation32_spill]] }
  0x96   : > { %2934 = vst [vmem:[#allocation60_spill] sm:$0xff] %v2039_v8  ;;  %2940 = sst [smem:[#allocation66_spill]] %s2062_s11  ;;  %s2964_s3 = sld [smem:[#allocation36_spill]] }
  0x97   : > { %2933 = vst [vmem:[#allocation59_spill] sm:$0xff] %v2028_v51  ;;  %2936 = vst [vmem:[#allocation62_spill] sm:$0xff] %v2046_v10  ;;  %s2954_s11 = sld [smem:[#allocation33_spill]] }
  0x98   : > { %805 = vrot.lane.b32.xlu1 %v1683_v12, %s1465_s19  ;;  %803 = vrot.lane.b32.xlu0 %v1686_v13, %s1465_s19  ;;  %v2042_v12 = vmul.f32 %v1691_v14, %v951_v36  ;;  %2942 = sst [smem:[#allocation68_spill]] %s2076_s4 }
  0x99   : > { %2943 = sst [smem:[#allocation69_spill]] %s2088_s21  ;;  %v2950_v16 = vstv %s2944_s7  ;;  %v2957_v33 = vstv %s2944_s7  ;;  %s2973_s7 = sld [smem:[#allocation39_spill]] }
  0x9a   : > { %2935 = vst [vmem:[#allocation61_spill] sm:$0xff] %v2042_v12  ;;  %v2951_v2 = vstv %s2945_s23  ;;  %s2977_s21 = sld [smem:[#allocation41_spill]] }
  0x9c   : > { %904 = vrot.lane.b32.xlu1 %v1691_v14, %s1465_s19  ;;  %902 = vrot.lane.b32.xlu0 %v1694_v15, %s1465_s19  ;;  %s1742_s19 = sld [smem:[#allocation2 + $0x17]] }
  0xa2   : > { %2908 = sst [smem:[#allocation34_spill]] %s1742_s19  ;;  %s1927_s19 = sld [smem:[#allocation2 + $0xf]] }
  0xa3   : > { %s2959_s4 = sld [smem:[#allocation34_spill]] }
  0xd2   : > { %v315_v36 = vpop.permute.xlu1 %314  ;;  %v216_v15 = vpop.permute.xlu0 %215 }
  0xd3   : > { %v318_v20 = vsel %vm206_vm0, %v315_v36, 0.0  ;;  %v219_v5 = vsel %vm206_vm0, %v216_v15, 0.0  ;;  %v2952_v36 = vstv %s2946_s16 }
  0xd4   : > { %v342_v10 = vmul.f32 %v2948_v29, %v318_v20  ;;  %v355_v15 = vmul.f32 %v2949_v1, %v318_v20  ;;  %v368_v42 = vmul.f32 %v2950_v16, %v318_v20  ;;  %v242_v0 = vmul.f32 %v2951_v2, %v219_v5 }
  0xd5   : > { %v255_v12 = vmul.f32 %v2952_v36, %v219_v5  ;;  %v2953_v29 = vstv %s2947_s18  ;;  %v2955_v20 = vstv %s1714_s22  ;;  %s2960_s22 = sld [smem:[#allocation35_spill]] }
  0xd6   : > { %v317_v4 = vpop.permute.xlu1 %316  ;;  %v218_v13 = vpop.permute.xlu0 %217  ;;  %v268_v8 = vmul.f32 %v2953_v29, %v219_v5  ;;  %v2133_v36 = vadd.f32 %v1777_v21, %v342_v10  ;;  %v2136_v5 = vadd.f32 %v1786_v24, %v355_v15  ;;  %v2958_v29 = vstv %s2945_s23  ;;  %s2966_s23 = sld [smem:[#allocation38_spill]] }
  0xd7   : > { %v319_v3 = vsel %vm206_vm0, %v317_v4, 0.0  ;;  %v220_v14 = vsel %vm206_vm0, %v218_v13, 0.0  ;;  %v2142_v46 = vadd.f32 %v1808_v32, %v368_v42  ;;  %v2152_v21 = vadd.f32 %v1824_v38, %v255_v12 }
  0xd8   : > { %v343_v16 = vmul.f32 %v2955_v20, %v319_v3  ;;  %v356_v2 = vmul.f32 %v2956_v23, %v319_v3  ;;  %v369_v62 = vmul.f32 %v2957_v33, %v319_v3  ;;  %v243_v22 = vmul.f32 %v2958_v29, %v220_v14 }
  0xd9   : > { %v2145_v23 = vadd.f32 %v1821_v37, %v242_v0  ;;  %v2961_v3 = vstv %s2946_s16  ;;  %v2155_v24 = vadd.f32 %v1834_v40, %v268_v8  ;;  %v2963_v10 = vstv %s2954_s11  ;;  %s2965_s16 = sld [smem:[#allocation37_spill]]  ;;  %s2987_s11 = sld [smem:[#allocation43_spill]] }
  0xda   : > { %v416_v1 = vpop.permute.xlu1 %415  ;;  %v414_v51 = vpop.permute.xlu0 %413  ;;  %v256_v33 = vmul.f32 %v2961_v3, %v220_v14  ;;  %v2162_v42 = vadd.f32 %v1791_v27, %v343_v16  ;;  %v2165_v38 = vadd.f32 %v1801_v31, %v356_v2  ;;  %v2168_v40 = vadd.f32 %v1812_v34, %v369_v62 }
  0xdb   : > { %v418_v13 = vsel %vm206_vm0, %v416_v1, 0.0  ;;  %v2962_v1 = vstv %s2947_s18  ;;  %v417_v32 = vsel %vm206_vm0, %v414_v51, 0.0  ;;  %v2173_v51 = vadd.f32 %v1827_v39, %v243_v22  ;;  %s2975_s18 = sld [smem:[#allocation40_spill]] }
  0xdc   : > { %v269_v20 = vmul.f32 %v2962_v1, %v220_v14  ;;  %v442_v15 = vmul.f32 %v2963_v10, %v418_v13  ;;  %v2967_v12 = vstv %s2959_s4  ;;  %v2968_v29 = vstv %s2960_s22  ;;  %s2986_s4 = sld [smem:[#allocation42_spill]]  ;;  %s2988_s22 = sld [smem:[#allocation44_spill]] }
  0xdd   : > { %v455_v14 = vmul.f32 %v2967_v12, %v418_v13  ;;  %v468_v3 = vmul.f32 %v2968_v29, %v418_v13  ;;  %v2182_v31 = vadd.f32 %v1837_v41, %v256_v33  ;;  %v2969_v62 = vmov %v2963_v10 }
  0xde   : > { %v515_v0 = vpop.permute.xlu1 %514  ;;  %v513_v37 = vpop.permute.xlu0 %512  ;;  %v2185_v34 = vadd.f32 %v1846_v44, %v269_v20  ;;  %v441_v16 = vmul.f32 %v2969_v62, %v417_v32  ;;  %v2970_v2 = vmov %v2967_v12  ;;  %v2192_v39 = vadd.f32 %v1849_v45, %v442_v15 }
  0xdf   : > { %v517_v8 = vsel %vm206_vm0, %v515_v0, 0.0  ;;  %v516_v27 = vsel %vm206_vm0, %v513_v37, 0.0  ;;  %v454_v22 = vmul.f32 %v2970_v2, %v417_v32  ;;  %v2972_v1 = vmov %v2968_v29 }
  0xe0   : > { %2971 = vst [vmem:[#allocation70_spill] sm:$0xff] %v2192_v39  ;;  %v467_v13 = vmul.f32 %v2972_v1, %v417_v32  ;;  %v2974_v10 = vstv %s2964_s3  ;;  %v2976_v41 = vstv %s2965_s16  ;;  %v2978_v20 = vstv %s2966_s23  ;;  %s2990_s3 = sld [smem:[#allocation45_spill]]  ;;  %s2993_s16 = sld [smem:[#allocation46_spill]] }
  0xe1   : > { %v541_v0 = vmul.f32 %v2974_v10, %v517_v8  ;;  %v554_v33 = vmul.f32 %v2976_v41, %v517_v8  ;;  %v567_v12 = vmul.f32 %v2978_v20, %v517_v8  ;;  %v2979_v29 = vmov %v2974_v10  ;;  %s3006_s23 = sld [smem:[#allocation48_spill]] }
  0xe2   : > { %v614_v37 = vpop.permute.xlu1 %613  ;;  %v612_v44 = vpop.permute.xlu0 %611  ;;  %v540_v62 = vmul.f32 %v2979_v29, %v516_v27  ;;  %v2209_v32 = vadd.f32 %v1868_v52, %v455_v14  ;;  %v2212_v2 = vadd.f32 %v1880_v56, %v468_v3  ;;  %v2980_v1 = vmov %v2976_v41 }
  0xe3   : > { %v616_v45 = vsel %vm206_vm0, %v614_v37, 0.0  ;;  %v615_v15 = vsel %vm206_vm0, %v612_v44, 0.0  ;;  %v553_v10 = vmul.f32 %v2980_v1, %v516_v27  ;;  %v2981_v41 = vmov %v2978_v20 }
  0xe4   : > { %v566_v4 = vmul.f32 %v2981_v41, %v516_v27  ;;  %v2219_v8 = vadd.f32 %v1859_v49, %v441_v16  ;;  %v2222_v20 = vadd.f32 %v1871_v53, %v454_v22  ;;  %v2982_v37 = vstv %s2973_s7  ;;  %s3007_s7 = sld [smem:[#allocation49_spill]] }
  0xe5   : > { %v640_v29 = vmul.f32 %v2982_v37, %v616_v45  ;;  %v2983_v44 = vstv %s2975_s18  ;;  %v2229_v52 = vadd.f32 %v1883_v57, %v467_v13  ;;  %v2232_v56 = vadd.f32 %v1892_v60, %v541_v0  ;;  %s3054_s18 = sld [smem:[#allocation54_spill]] }
  0xe6   : > { %v653_v39 = vmul.f32 %v2983_v44, %v616_v45  ;;  %v2984_v14 = vstv %s2977_s21  ;;  %v2985_v27 = vmov %v2982_v37  ;;  %v713_v16 = vpop.permute.xlu1 %712  ;;  %v711_v1 = vpop.permute.xlu0 %710  ;;  %v2239_v53 = vadd.f32 %v1895_v61, %v554_v33  ;;  %s3003_s21 = sld [smem:[#allocation47_spill]] }
  0xe7   : > { %v666_v3 = vmul.f32 %v2984_v14, %v616_v45  ;;  %v639_v49 = vmul.f32 %v2985_v27, %v615_v15  ;;  %v2242_v22 = vadd.f32 %v1906_v17, %v567_v12  ;;  %v2245_v57 = vadd.f32 %v1899_v63, %v540_v62 }
  0xe8   : > { %v715_v60 = vsel %vm206_vm0, %v713_v16, 0.0  ;;  %v2250_v13 = vadd.f32 %v1909_v18, %v553_v10  ;;  %v2253_v0 = vadd.f32 %v1918_v26, %v566_v4  ;;  %v2989_v61 = vmov %v2983_v44 }
  0xe9   : > { %v652_v33 = vmul.f32 %v2989_v61, %v615_v15  ;;  %v714_v17 = vsel %vm206_vm0, %v711_v1, 0.0  ;;  %v2261_v63 = vadd.f32 %v1921_v30, %v640_v29  ;;  %v2264_v12 = vadd.f32 %v1940_v7, %v653_v39 }
  0xea   : > { %v2991_v18 = vmov %v2984_v14  ;;  %v2992_v26 = vstv %s2986_s4  ;;  %v2271_v45 = vadd.f32 %v1952_v59, %v666_v3  ;;  %v2274_v10 = vadd.f32 %v1931_v47, %v639_v49  ;;  %v812_v44 = vpop.permute.xlu1 %811  ;;  %v810_v7 = vpop.permute.xlu0 %809  ;;  %s3056_s4 = sld [smem:[#allocation53_spill]] }
  0xeb   : > { %v665_v62 = vmul.f32 %v2991_v18, %v615_v15  ;;  %v739_v4 = vmul.f32 %v2992_v26, %v715_v60  ;;  %v2994_v41 = vstv %s2987_s11  ;;  %v2995_v37 = vstv %s2988_s22  ;;  %s1466_s22 = smov [#allocation7]  }
  0xec   : > { %v752_v30 = vmul.f32 %v2994_v41, %v715_v60  ;;  %v765_v29 = vmul.f32 %v2995_v37, %v715_v60  ;;  %v2996_v39 = vmov %v2992_v26  ;;  %v2997_v14 = vmov %v2994_v41 }
  0xed   : > { %v738_v15 = vmul.f32 %v2996_v39, %v714_v17  ;;  %v751_v27 = vmul.f32 %v2997_v14, %v714_v17  ;;  %v814_v59 = vsel %vm206_vm0, %v812_v44, 0.0  ;;  %v813_v47 = vsel %vm206_vm0, %v810_v7, 0.0 }
  0xee   : > { %v2289_v3 = vadd.f32 %v1943_v55, %v652_v33  ;;  %v2998_v49 = vmov %v2995_v37  ;;  %v2999_v1 = vstv %s2990_s3  ;;  %v3000_v61 = vstv %s1841_s30  ;;  %s3011_s30 = sld [smem:[#allocation50_spill]]  ;;  %s1376_s3 = sshll.u32 %s1466_s22, 4  ;;  %s1377_s3 = int_to_ptr.vmem [resolvable:$false] %s1376_s3 }
  0xef   : > { %v764_v16 = vmul.f32 %v2998_v49, %v714_v17  ;;  %v838_v60 = vmul.f32 %v2999_v1, %v814_v59  ;;  %v851_v18 = vmul.f32 %v3000_v61, %v814_v59  ;;  %v2298_v26 = vadd.f32 %v1955_v43, %v665_v62  ;;  %v911_v43 = vpop.permute.xlu1 %910 }
  0xf0   : > { %v2301_v41 = vadd.f32 %v1964_v25, %v739_v4  ;;  %v3001_v37 = vstv %s2993_s16  ;;  %v3002_v39 = vmov %v2999_v1  ;;  %v2308_v55 = vadd.f32 %v1967_v35, %v752_v30  ;;  %v909_v25 = vpop.permute.xlu0 %908  ;;  %s1378_s16 = scalar_lea.vmem %s1377_s3, 4096 }
  0xf1   : > { %v864_v44 = vmul.f32 %v3001_v37, %v814_v59  ;;  %v837_v7 = vmul.f32 %v3002_v39, %v813_v47  ;;  %v2311_v33 = vadd.f32 %v1979_v9, %v765_v29  ;;  %v3004_v17 = vmov %v3000_v61  ;;  %v3009_v59 = vld [vmem:[#allocation57_spill] sm:$0xff]  ;;  %v3014_v61 = vld [vmem:[#allocation58_spill] sm:$0xff] }
  0xf2   : > { %v850_v14 = vmul.f32 %v3004_v17, %v813_v47  ;;  %v3005_v49 = vmov %v3001_v37  ;;  %v2318_v62 = vadd.f32 %v1971_v54, %v738_v15  ;;  %v2321_v4 = vadd.f32 %v1982_v6, %v751_v27  ;;  %v3016_v37 = vld [vmem:[#allocation59_spill] sm:$0xff] }
  0xf3   : > { %v863_v1 = vmul.f32 %v3005_v49, %v813_v47  ;;  %v913_v35 = vsel %vm206_vm0, %v911_v43, 0.0  ;;  %v912_v9 = vsel %vm206_vm0, %v909_v25, 0.0  ;;  %v2329_v30 = vadd.f32 %v1991_v50, %v764_v16  ;;  %v212_v49 = vpop.permute.xlu1 %211  ;;  %v3021_v25 = vld [vmem:[#allocation60_spill] sm:$0xff] }
  0xf4   : > { %v2332_v29 = vadd.f32 %v1994_v48, %v838_v60  ;;  %v2335_v54 = vadd.f32 %v2013_v11, %v851_v18  ;;  %v3008_v6 = vstv %s3003_s21  ;;  %v2342_v27 = vadd.f32 %v2025_v58, %v864_v44  ;;  %v3013_v60 = vld [vmem:[#allocation67_spill] sm:$0xff]  ;;  %v210_v43 = vpop.permute.xlu0 %209 }
  0xf5   : > { %v937_v15 = vmul.f32 %v3008_v6, %v913_v35  ;;  %v2345_v50 = vadd.f32 %v3009_v59, %v837_v7  ;;  %v3010_v48 = vstv %s3006_s23  ;;  %v3012_v11 = vstv %s3007_s7 }
  0xf6   : > { %v950_v47 = vmul.f32 %v3010_v48, %v913_v35  ;;  %v963_v16 = vmul.f32 %v3012_v11, %v913_v35  ;;  %vm202_vm5 = vcmp.lt.s32.totalorder %v3013_v60, 15  ;;  %v2353_v18 = vadd.f32 %v3014_v61, %v850_v14 }
  0xf7   : > { %v2356_v39 = vadd.f32 %v3016_v37, %v863_v1  ;;  %v3018_v58 = vmov %v3008_v6  ;;  %v3019_v7 = vmov %v3010_v48  ;;  %v2367_v35 = vadd.f32 %v3021_v25, %v937_v15  ;;  %v3030_v25 = vld [vmem:[#allocation63_spill] sm:$0xff] }
  0xf8   : > { %3015 = vst [vmem:[#allocation57_spill] sm:$0xff] %v2353_v18  ;;  %v2360_v44 = vmul.f32 %v3018_v58, %v912_v9  ;;  %v2364_v17 = vmul.f32 %v3019_v7, %v912_v9  ;;  %v3023_v6 = vmov %v3012_v11  ;;  %v214_v14 = vsel %vm205_vm1, %v212_v49, 0.0  ;;  %v3029_v18 = vld [vmem:[#allocation61_spill] sm:$0xff] }
  0xf9   : > { %3017 = vst [vmem:[#allocation67_spill] sm:$0xff] %v2356_v39  ;;  %3022 = vst [vmem:[#allocation59_spill] sm:$0xff] %v2367_v35  ;;  %v2371_v59 = vmul.f32 %v3023_v6, %v912_v9  ;;  %v213_v1 = vsel %vm205_vm1, %v210_v43, 0.0  ;;  %v3025_v48 = vstv %s1901_s14  ;;  %v3026_v61 = vstv %s1903_s9  ;;  %s3044_s14 = sld [smem:[#allocation21_spill]] }
  0xfa   : > { %3020 = vst [vmem:[#allocation58_spill] sm:$0xff] %v2364_v17  ;;  %v251_v11 = vmul.f32 %v3025_v48, %v214_v14  ;;  %v264_v37 = vmul.f32 %v3026_v61, %v214_v14  ;;  %v3027_v58 = vstv %s3011_s30  ;;  %v3028_v17 = vmov %v3025_v48 }
  0xfb   : > { %3024 = vst [vmem:[#allocation60_spill] sm:$0xff] %v2371_v59  ;;  %v277_v7 = vmul.f32 %v3027_v58, %v214_v14  ;;  %v250_v39 = vmul.f32 %v3028_v17, %v213_v1  ;;  %v2386_v15 = vadd.f32 %v3029_v18, %v950_v47  ;;  %v2389_v9 = vadd.f32 %v3030_v25, %v963_v16  ;;  %v311_v18 = vpop.permute.xlu1 %310  ;;  %v309_v14 = vpop.permute.xlu0 %308 }
  0xfc   : > { %v3031_v6 = vmov %v3026_v61  ;;  %v3032_v59 = vmov %v3027_v58  ;;  %v253_v43 = vadd.f32 %v251_v11, %v2173_v51  ;;  %v266_v48 = vadd.f32 %v264_v37, %v2182_v31 }
  0xfd   : > { %v263_v49 = vmul.f32 %v3031_v6, %v213_v1  ;;  %v276_v35 = vmul.f32 %v3032_v59, %v213_v1  ;;  %v279_v17 = vadd.f32 %v277_v7, %v2185_v34  ;;  %v252_v47 = vadd.f32 %v250_v39, %v2145_v23 }
  0xfe   : > { %v313_v59 = vsel %vm205_vm1, %v311_v18, 0.0  ;;  %v312_v51 = vsel %vm205_vm1, %v309_v14, 0.0  ;;  %v281_v1 = vrot.slane %v253_v43, 7  ;;  %v3033_v37 = vstv %s1925_s25  ;;  %s3038_s25 = sld [smem:[#allocation52_spill]] }
  0xff   : > { %v265_v16 = vadd.f32 %v263_v49, %v2152_v21  ;;  %v278_v61 = vadd.f32 %v276_v35, %v2155_v24  ;;  %v290_v31 = vrot.slane %v279_v17, 1  ;;  %v280_v11 = vrot.slane %v252_v47, 7  ;;  %v410_v47 = vpop.permute.xlu1 %409  ;;  %s3051_s9 = sshll.u32 %s3044_s14, 7 }
 0x100   : > { %v351_v34 = vmul.f32 %v3033_v37, %v313_v59  ;;  %v3034_v23 = vstv %s1927_s19  ;;  %v3035_v7 = vstv %s1935_s29  ;;  %v3036_v6 = vmov %v3033_v37  ;;  %s3039_s19 = sld [smem:[#allocation51_spill]] }
 0x101   : > { %v289_v58 = vrot.slane %v278_v61, 1  ;;  %v364_v39 = vmul.f32 %v3034_v23, %v313_v59  ;;  %v377_v25 = vmul.f32 %v3035_v7, %v313_v59  ;;  %v350_v21 = vmul.f32 %v3036_v6, %v312_v51  ;;  %v408_v6 = vpop.permute.xlu0 %407 }
 0x102   : > { %v283_v24 = vsel %vm282_vm2, %v280_v11, %v281_v1  ;;  %v284_v35 = vsel %vm282_vm2, %v281_v1, %v280_v11  ;;  %v353_v49 = vadd.f32 %v351_v34, %v2162_v42  ;;  %v3037_v43 = vmov %v3034_v23 }
 0x103   : > { %v363_v17 = vmul.f32 %v3037_v43, %v312_v51  ;;  %v285_v18 = vsel %vm203_vm3, %v284_v35, 0.0  ;;  %v288_v14 = vadd.f32 %v283_v24, %v266_v48  ;;  %v292_v61 = vsel %vm291_vm4, %v289_v58, %v290_v31 }
 0x104   : > { %v293_v59 = vsel %vm291_vm4, %v290_v31, %v289_v58  ;;  %v287_v37 = vadd.f32 %v285_v18, %v265_v16  ;;  %v366_v1 = vadd.f32 %v364_v39, %v2165_v38  ;;  %v379_v11 = vadd.f32 %v377_v25, %v2168_v40  ;;  %v3041_v38 = vld [vmem:[#allocation26_spill] sm:$0xff] }
 0x105   : > { %v295_v42 = vsel %vm202_vm5, %v293_v59, 0.0  ;;  %v381_v23 = vrot.slane %v353_v49, 7  ;;  %v352_v48 = vadd.f32 %v350_v21, %v2133_v36  ;;  %v365_v7 = vadd.f32 %v363_v17, %v2136_v5  ;;  %v3045_v21 = vld [vmem:[#allocation24_spill] sm:$0xff] }
 0x106   : > { %v297_v34 = vadd.f32 %v295_v42, %v288_v14  ;;  %v296_v31 = vadd.f32 %v292_v61, %v287_v37  ;;  %v389_v58 = vrot.slane %v379_v11, 1  ;;  %v3040_v16 = vstv %s1935_s29  ;;  %v509_v61 = vpop.permute.xlu1 %508  ;;  %v3048_v11 = vld [vmem:[#allocation70_spill] sm:$0xff]  ;;  %s2464_s29 = scalar_lea.vmem [#allocation7], %s3051_s9 }
 0x107   : > { %v376_v24 = vmul.f32 %v3040_v16, %v312_v51  ;;  %v412_v35 = vsel %vm205_vm1, %v410_v47, 0.0  ;;  %v380_v40 = vrot.slane %v352_v48, 7  ;;  %v3042_v25 = vstv %s3038_s25 }
 0x108   : > { %v299_v39 = vadd.f32 %v297_v34, %v3041_v38  ;;  %v450_v43 = vmul.f32 %v3042_v25, %v412_v35  ;;  %v3043_v49 = vstv %s1947_s20  ;;  %v298_v18 = vadd.f32 %v296_v31, %v3045_v21  ;;  %s3065_s20 = sld [smem:[#allocation55_spill]] }
 0x109   : > { %v463_v36 = vmul.f32 %v3043_v49, %v412_v35  ;;  %v378_v5 = vadd.f32 %v376_v24, %v2142_v46  ;;  %v3046_v17 = vstv %s1949_s5  ;;  %v411_v51 = vsel %vm205_vm1, %v408_v6, 0.0  ;;  %v3050_v24 = vld [vmem:[#allocation62_spill] sm:$0xff]  ;;  %s3064_s5 = sld [smem:[#allocation56_spill]] }
 0x10a   : > { %v476_v14 = vmul.f32 %v3046_v17, %v412_v35  ;;  %v3047_v59 = vstv %s3039_s19  ;;  %v382_v37 = vsel %vm282_vm2, %v380_v40, %v381_v23  ;;  %v383_v42 = vsel %vm282_vm2, %v381_v23, %v380_v40 }
 0x10b   : > { %v302_v47 = vadd.f32 %v3047_v59, %v299_v39  ;;  %v452_v34 = vadd.f32 %v450_v43, %v3048_v11  ;;  %v3049_v48 = vmov %v3047_v59  ;;  %v384_v31 = vsel %vm203_vm3, %v383_v42, 0.0  ;;  %v608_v59 = vpop.permute.xlu1 %607 }
 0x10c   : > { %v301_v46 = vadd.f32 %v3049_v48, %v298_v18  ;;  %v387_v16 = vadd.f32 %v382_v37, %v366_v1  ;;  %v388_v6 = vrot.slane %v378_v5, 1  ;;  %v2460_v35 = vadd.f32 %v3050_v24, %v2360_v44  ;;  %v507_v18 = vpop.permute.xlu0 %506 }
 0x10d   : > { %304 = vst [vmem:[%s2464_s29 + $0x8] sm:$0xff] %v302_v47  ;;  %v386_v23 = vadd.f32 %v384_v31, %v365_v7  ;;  %v465_v38 = vadd.f32 %v463_v36, %v2209_v32  ;;  %v478_v39 = vadd.f32 %v476_v14, %v2212_v2  ;;  %v3052_v40 = vmov %v3042_v25  ;;  %v3057_v47 = vld [vmem:[#allocation23_spill] sm:$0xff] }
 0x10e   : > { %303 = vst [vmem:[%s2464_s29] sm:$0xff] %v301_v46  ;;  %v390_v1 = vsel %vm291_vm4, %v388_v6, %v389_v58  ;;  %v391_v44 = vsel %vm291_vm4, %v389_v58, %v388_v6  ;;  %v449_v25 = vmul.f32 %v3052_v40, %v411_v51  ;;  %v3053_v43 = vmov %v3043_v49 }
 0x10f   : > { %v462_v49 = vmul.f32 %v3053_v43, %v411_v51  ;;  %v393_v7 = vsel %vm202_vm5, %v391_v44, 0.0  ;;  %v394_v21 = vadd.f32 %v390_v1, %v386_v23  ;;  %v480_v32 = vrot.slane %v452_v34, 7 }
 0x110   : > { %v3055_v2 = vmov %v3046_v17  ;;  %v395_v5 = vadd.f32 %v393_v7, %v387_v16  ;;  %v488_v17 = vrot.slane %v478_v39, 1  ;;  %v451_v58 = vadd.f32 %v449_v25, %v2219_v8 }
 0x111   : > { %v475_v36 = vmul.f32 %v3055_v2, %v411_v51  ;;  %v511_v14 = vsel %vm205_vm1, %v509_v61, 0.0  ;;  %v396_v37 = vadd.f32 %v3057_v47, %v394_v21  ;;  %v3058_v11 = vstv %s1961_s24  ;;  %v3060_v51 = vld [vmem:[#allocation25_spill] sm:$0xff]  ;;  %v606_v2 = vpop.permute.xlu0 %605  ;;  %s3077_s24 = sld [smem:[#allocation22_spill]] }
 0x112   : > { %v549_v34 = vmul.f32 %v3058_v11, %v511_v14  ;;  %v3059_v48 = vstv %s1973_s28  ;;  %v397_v31 = vadd.f32 %v3060_v51, %v395_v5  ;;  %v464_v16 = vadd.f32 %v462_v49, %v2222_v20  ;;  %v707_v5 = vpop.permute.xlu1 %706  ;;  %s1015_s28 = sshll.u32 %s2464_s29, 4  ;;  %s2729_s28 = int_to_ptr.vmem [resolvable:$true] %s1015_s28 }
 0x113   : > { %v477_v42 = vadd.f32 %v475_v36, %v2229_v52  ;;  %v562_v46 = vmul.f32 %v3059_v48, %v511_v14  ;;  %v479_v6 = vrot.slane %v451_v58, 7  ;;  %v3061_v24 = vstv %s3054_s18  ;;  %s1372_s11 = scalar_lea.vmem %s2729_s28, 2048  ;;  %p1379_p6 = scmp.lt.s32.totalorder %s2729_s28, %s1377_s3 }
 0x114   : > { %v575_v8 = vmul.f32 %v3061_v24, %v511_v14  ;;  %v3062_v23 = vstv %s3056_s4  ;;  %v551_v1 = vadd.f32 %v549_v34, %v2232_v56  ;;  %v510_v52 = vsel %vm205_vm1, %v507_v18, 0.0  ;;  %p1373_p8 = scmp.ne.s32.totalorder %s2729_s28, %s1372_s11  ;;  %p1380_p1 = scmp.lt.s32.totalorder %s1378_s16, %s1372_s11 }
 0x115   : > { %v399_v61 = vadd.f32 %v3062_v23, %v396_v37  ;;  %v487_v39 = vrot.slane %v477_v42, 1  ;;  %v3063_v44 = vmov %v3062_v23  ;;  %v481_v25 = vsel %vm282_vm2, %v479_v6, %v480_v32 }
 0x116   : > { %v400_v40 = vadd.f32 %v3063_v44, %v397_v31  ;;  %v482_v20 = vsel %vm282_vm2, %v480_v32, %v479_v6  ;;  %v577_v43 = vadd.f32 %v575_v8, %v2242_v22  ;;  %v486_v56 = vadd.f32 %v481_v25, %v465_v38  ;;  %p1381_p7 = por %p1380_p1, %p1379_p6 }
 0x117   : > { %1147 = vst [vmem:[%s2464_s29 + $0x10] sm:$0xff] %v399_v61  ;;  %v483_v49 = vsel %vm203_vm3, %v482_v20, 0.0  ;;  %v490_v7 = vsel %vm291_vm4, %v488_v17, %v487_v39  ;;  %v564_v21 = vadd.f32 %v562_v46, %v2239_v53  ;;  %v489_v32 = vsel %vm291_vm4, %v487_v39, %v488_v17  ;;  %v3069_v46 = vld [vmem:[#allocation27_spill] sm:$0xff]  ;;  %v1324_v19 = vld [vmem:[%s3077_s24 + $0x50] sm:$0xff] }
 0x118   : > { %1148 = vst [vmem:[%s2464_s29 + $0x18] sm:$0xff] %v400_v40  ;;  %v485_v36 = vadd.f32 %v483_v49, %v464_v16  ;;  %v492_v22 = vsel %vm202_vm5, %v490_v7, 0.0  ;;  %v579_v18 = vrot.slane %v551_v1, 7  ;;  %v587_v58 = vrot.slane %v577_v43, 1 }
 0x119   : > { %v494_v38 = vadd.f32 %v492_v22, %v486_v56  ;;  %v3066_v14 = vmov %v3058_v11  ;;  %v3067_v53 = vmov %v3061_v24  ;;  %v3068_v11 = vmov %v3059_v48  ;;  %v3070_v24 = vld [vmem:[#allocation28_spill] sm:$0xff] }
 0x11a   : > { %v548_v47 = vmul.f32 %v3066_v14, %v510_v52  ;;  %v574_v37 = vmul.f32 %v3067_v53, %v510_v52  ;;  %v493_v42 = vadd.f32 %v489_v32, %v485_v36  ;;  %v561_v17 = vmul.f32 %v3068_v11, %v510_v52 }
 0x11b   : > { %v610_v34 = vsel %vm205_vm1, %v608_v59, 0.0  ;;  %v609_v48 = vsel %vm205_vm1, %v606_v2, 0.0  ;;  %v496_v51 = vadd.f32 %v3069_v46, %v494_v38  ;;  %v709_v6 = vsel %vm205_vm1, %v707_v5, 0.0 }
 0x11c   : > { %v550_v31 = vadd.f32 %v548_v47, %v2245_v57  ;;  %v576_v16 = vadd.f32 %v574_v37, %v2253_v0  ;;  %v495_v8 = vadd.f32 %v3070_v24, %v493_v42  ;;  %v3071_v23 = vstv %s3064_s5 }
 0x11d   : > { %v648_v61 = vmul.f32 %v3071_v23, %v610_v34  ;;  %v3072_v39 = vstv %s1998_s12  ;;  %v3073_v1 = vstv %s2000_s2  ;;  %v3074_v44 = vstv %s3065_s20  ;;  %s3096_s2 = sld [smem:[#allocation66_spill]]  ;;  %s3099_s12 = sld [smem:[#allocation68_spill]] }
 0x11e   : > { %v661_v59 = vmul.f32 %v3072_v39, %v610_v34  ;;  %v674_v52 = vmul.f32 %v3073_v1, %v610_v34  ;;  %v499_v40 = vadd.f32 %v3074_v44, %v496_v51  ;;  %v578_v25 = vrot.slane %v550_v31, 7 }
 0x11f   : > { %v586_v20 = vrot.slane %v576_v16, 1  ;;  %v3075_v43 = vmov %v3071_v23  ;;  %v3076_v49 = vmov %v3074_v44  ;;  %v563_v56 = vadd.f32 %v561_v17, %v2250_v13  ;;  %v1319_v23 = vld [vmem:[%s3077_s24 + $0x38] sm:$0xff] }
 0x120   : > { %v647_v57 = vmul.f32 %v3075_v43, %v609_v48  ;;  %v498_v0 = vadd.f32 %v3076_v49, %v495_v8  ;;  %v650_v7 = vadd.f32 %v648_v61, %v2261_v63  ;;  %v663_v2 = vadd.f32 %v661_v59, %v2264_v12  ;;  %1162 = vst [vmem:[%s2464_s29 + $0x28] sm:$0xff] %v499_v40  ;;  %v705_v8 = vpop.permute.xlu0 %704  ;;  %v1320_v59 = vld [vmem:[%s3077_s24 + $0x30] sm:$0xff]  ;;  %v806_v40 = vpop.permute.xlu1 %805 }
 0x121   : > { %v580_v36 = vsel %vm282_vm2, %v578_v25, %v579_v18  ;;  %v581_v32 = vsel %vm282_vm2, %v579_v18, %v578_v25  ;;  %v589_v22 = vsel %vm291_vm4, %v587_v58, %v586_v20  ;;  %v676_v13 = vadd.f32 %v674_v52, %v2271_v45 }
 0x122   : > { %1161 = vst [vmem:[%s2464_s29 + $0x20] sm:$0xff] %v498_v0  ;;  %v582_v63 = vsel %vm203_vm3, %v581_v32, 0.0  ;;  %v585_v12 = vadd.f32 %v580_v36, %v564_v21  ;;  %v588_v5 = vsel %vm291_vm4, %v586_v20, %v587_v58  ;;  %v591_v38 = vsel %vm202_vm5, %v589_v22, 0.0 }
 0x123   : > { %v584_v14 = vadd.f32 %v582_v63, %v563_v56  ;;  %v678_v18 = vrot.slane %v650_v7, 7  ;;  %v649_v47 = vadd.f32 %v647_v57, %v2274_v10  ;;  %v3078_v53 = vmov %v3072_v39 }
 0x124   : > { %v660_v45 = vmul.f32 %v3078_v53, %v609_v48  ;;  %v593_v37 = vadd.f32 %v591_v38, %v585_v12  ;;  %v3079_v42 = vmov %v3073_v1  ;;  %v3080_v17 = vstv %s2010_s6  ;;  %s2694_s6 = sld [smem:[#allocation2 + $0x4f]] }
 0x125   : > { %v673_v11 = vmul.f32 %v3079_v42, %v609_v48  ;;  %v747_v34 = vmul.f32 %v3080_v17, %v709_v6  ;;  %v3081_v21 = vstv %s2020_s15  ;;  %v592_v51 = vadd.f32 %v588_v5, %v584_v14  ;;  %v804_v5 = vpop.permute.xlu0 %803  ;;  %v1321_v42 = vld [vmem:[%s3077_s24 + $0x40] sm:$0xff] }
 0x126   : > { %v760_v46 = vmul.f32 %v3081_v21, %v709_v6  ;;  %v686_v58 = vrot.slane %v676_v13, 1  ;;  %v677_v31 = vrot.slane %v649_v47, 7  ;;  %v3082_v16 = vstv %s2022_s17  ;;  %s3112_s17 = sld [smem:[#allocation69_spill]] }
 0x127   : > { %v773_v24 = vmul.f32 %v3082_v16, %v709_v6  ;;  %v595_v10 = vadd.f32 %v1319_v23, %v593_v37  ;;  %v662_v61 = vadd.f32 %v660_v45, %v2289_v3  ;;  %v675_v39 = vadd.f32 %v673_v11, %v2298_v26 }
 0x128   : > { %v749_v48 = vadd.f32 %v747_v34, %v2301_v41  ;;  %v594_v1 = vadd.f32 %v1320_v59, %v592_v51  ;;  %v679_v52 = vsel %vm282_vm2, %v677_v31, %v678_v18  ;;  %v680_v44 = vsel %vm282_vm2, %v678_v18, %v677_v31  ;;  %v1322_v51 = vld [vmem:[%s3077_s24 + $0x48] sm:$0xff] }
 0x129   : > { %v762_v6 = vadd.f32 %v760_v46, %v2308_v55  ;;  %v3083_v25 = vstv %s2008_s27  ;;  %v681_v3 = vsel %vm203_vm3, %v680_v44, 0.0  ;;  %v684_v26 = vadd.f32 %v679_v52, %v663_v2 }
 0x12a   : > { %v598_v20 = vadd.f32 %v3083_v25, %v595_v10  ;;  %v685_v41 = vrot.slane %v675_v39, 1  ;;  %v3084_v43 = vmov %v3083_v25  ;;  %v683_v49 = vadd.f32 %v681_v3, %v662_v61  ;;  %v905_v25 = vpop.permute.xlu1 %904 }
 0x12b   : > { %v597_v57 = vadd.f32 %v3084_v43, %v594_v1  ;;  %v775_v0 = vadd.f32 %v773_v24, %v2311_v33  ;;  %v777_v56 = vrot.slane %v749_v48, 7  ;;  %v708_v2 = vsel %vm205_vm1, %v705_v8, 0.0 }
 0x12c   : > { %1176 = vst [vmem:[%s2464_s29 + $0x38] sm:$0xff] %v598_v20  ;;  %v687_v55 = vsel %vm291_vm4, %v685_v41, %v686_v58  ;;  %v688_v7 = vsel %vm291_vm4, %v686_v58, %v685_v41  ;;  %v808_v36 = vsel %vm205_vm1, %v806_v40, 0.0  ;;  %v3085_v22 = vmov %v3080_v17  ;;  %v903_v20 = vpop.permute.xlu0 %902 }
 0x12d   : > { %1175 = vst [vmem:[%s2464_s29 + $0x30] sm:$0xff] %v597_v57  ;;  %v690_v33 = vsel %vm202_vm5, %v688_v7, 0.0  ;;  %v691_v32 = vadd.f32 %v687_v55, %v683_v49  ;;  %v746_v13 = vmul.f32 %v3085_v22, %v708_v2  ;;  %v3086_v63 = vmov %v3081_v21 }
 0x12e   : > { %v759_v12 = vmul.f32 %v3086_v63, %v708_v2  ;;  %v692_v38 = vadd.f32 %v690_v33, %v684_v26  ;;  %v3087_v14 = vmov %v3082_v16  ;;  %v3088_v47 = vstv %s2036_s26  ;;  %v3097_v33 = vld [vmem:[#allocation57_spill] sm:$0xff] }
 0x12f   : > { %v772_v18 = vmul.f32 %v3087_v14, %v708_v2  ;;  %v846_v53 = vmul.f32 %v3088_v47, %v808_v36  ;;  %v3089_v45 = vstv %s2048_s13  ;;  %v693_v11 = vadd.f32 %v1321_v42, %v691_v32  ;;  %s999_s13 = scalar_lea.sflag [#allocation4], %s3044_s14 }
 0x130   : > { %v859_v37 = vmul.f32 %v3089_v45, %v808_v36  ;;  %v785_v17 = vrot.slane %v775_v0, 1  ;;  %v748_v34 = vadd.f32 %v746_v13, %v2318_v62  ;;  %v3090_v21 = vstv %s2050_s1 }
 0x131   : > { %v872_v46 = vmul.f32 %v3090_v21, %v808_v36  ;;  %v694_v58 = vadd.f32 %v1322_v51, %v692_v38  ;;  %v761_v31 = vadd.f32 %v759_v12, %v2321_v4  ;;  %v774_v16 = vadd.f32 %v772_v18, %v2329_v30  ;;  %v1323_v12 = vld [vmem:[%s3077_s24 + $0x58] sm:$0xff] }
 0x132   : > { %v848_v24 = vadd.f32 %v846_v53, %v2332_v29  ;;  %v3091_v8 = vstv %s2034_s0  ;;  %v776_v10 = vrot.slane %v748_v34, 7  ;;  %v807_v62 = vsel %vm205_vm1, %v804_v5, 0.0  ;;  %v3100_v5 = vld [vmem:[#allocation67_spill] sm:$0xff]  ;;  %s3118_s0 = sld [smem:[#allocation73_spill]] }
 0x133   : > { %v696_v23 = vadd.f32 %v3091_v8, %v693_v11  ;;  %v874_v61 = vadd.f32 %v872_v46, %v2342_v27  ;;  %v3092_v39 = vmov %v3091_v8  ;;  %v784_v59 = vrot.slane %v774_v16, 1  ;;  %v3103_v11 = vld [vmem:[#allocation59_spill] sm:$0xff] }
 0x134   : > { %v697_v48 = vadd.f32 %v3092_v39, %v694_v58  ;;  %v861_v1 = vadd.f32 %v859_v37, %v2335_v54  ;;  %v3093_v52 = vmov %v3088_v47  ;;  %v778_v30 = vsel %vm282_vm2, %v776_v10, %v777_v56 }
 0x135   : > { %v845_v4 = vmul.f32 %v3093_v52, %v807_v62  ;;  %1189 = vst [vmem:[%s2464_s29 + $0x40] sm:$0xff] %v696_v23  ;;  %v779_v29 = vsel %vm282_vm2, %v777_v56, %v776_v10  ;;  %v876_v44 = vrot.slane %v848_v24, 7  ;;  %v3094_v27 = vmov %v3089_v45 }
 0x136   : > { %v858_v40 = vmul.f32 %v3094_v27, %v807_v62  ;;  %1190 = vst [vmem:[%s2464_s29 + $0x48] sm:$0xff] %v697_v48  ;;  %v780_v54 = vsel %vm203_vm3, %v779_v29, 0.0  ;;  %v783_v3 = vadd.f32 %v778_v30, %v762_v6  ;;  %v787_v26 = vsel %vm291_vm4, %v785_v17, %v784_v59  ;;  %v3111_v27 = vld [vmem:[#allocation65_spill] sm:$0xff] }
 0x137   : > { %v884_v41 = vrot.slane %v874_v61, 1  ;;  %v782_v43 = vadd.f32 %v780_v54, %v761_v31  ;;  %v786_v57 = vsel %vm291_vm4, %v784_v59, %v785_v17  ;;  %v789_v49 = vsel %vm202_vm5, %v787_v26, 0.0  ;;  %v3107_v59 = vld [vmem:[#allocation58_spill] sm:$0xff] }
 0x138   : > { %v847_v0 = vadd.f32 %v845_v4, %v2345_v50  ;;  %v791_v56 = vadd.f32 %v789_v49, %v783_v3  ;;  %v3095_v55 = vmov %v3090_v21  ;;  %v907_v6 = vsel %vm205_vm1, %v905_v25, 0.0  ;;  %v1325_v3 = vld [vmem:[%s3077_s24 + $0x60] sm:$0xff]  ;;  %v1326_v49 = vld [vmem:[%s3077_s24 + $0x68] sm:$0xff] }
 0x139   : > { %v871_v7 = vmul.f32 %v3095_v55, %v807_v62  ;;  %v906_v2 = vsel %vm205_vm1, %v903_v20, 0.0  ;;  %v790_v36 = vadd.f32 %v786_v57, %v782_v43  ;;  %v860_v32 = vadd.f32 %v858_v40, %v3097_v33 }
 0x13a   : > { %v875_v22 = vrot.slane %v847_v0, 7  ;;  %v3098_v13 = vstv %s2068_s8  ;;  %v793_v50 = vadd.f32 %v1323_v12, %v791_v56  ;;  %v3101_v14 = vstv %s2078_s10  ;;  %s3114_s10 = sld [smem:[#allocation14_spill]]  ;;  %s3117_s8 = sld [smem:[#allocation17_spill]] }
 0x13b   : > { %v945_v63 = vmul.f32 %v3098_v13, %v907_v6  ;;  %v873_v38 = vadd.f32 %v871_v7, %v3100_v5  ;;  %v971_v18 = vmul.f32 %v3101_v14, %v907_v6  ;;  %v3102_v47 = vmov %v3098_v13 }
 0x13c   : > { %v944_v53 = vmul.f32 %v3102_v47, %v906_v2  ;;  %v792_v45 = vadd.f32 %v1324_v19, %v790_v36  ;;  %v877_v37 = vsel %vm282_vm2, %v875_v22, %v876_v44  ;;  %v878_v42 = vsel %vm282_vm2, %v876_v44, %v875_v22  ;;  %v3110_v44 = vld [vmem:[#allocation60_spill] sm:$0xff] }
 0x13d   : > { %v947_v17 = vadd.f32 %v945_v63, %v3103_v11  ;;  %v3104_v34 = vstv %s3096_s2  ;;  %v879_v46 = vsel %vm203_vm3, %v878_v42, 0.0  ;;  %v882_v51 = vadd.f32 %v877_v37, %v861_v1  ;;  %v3108_v1 = vld [vmem:[#allocation64_spill] sm:$0xff] }
 0x13e   : > { %v796_v21 = vadd.f32 %v3104_v34, %v793_v50  ;;  %v883_v58 = vrot.slane %v873_v38, 1  ;;  %v3105_v31 = vmov %v3104_v34  ;;  %v881_v24 = vadd.f32 %v879_v46, %v860_v32 }
 0x13f   : > { %v795_v16 = vadd.f32 %v3105_v31, %v792_v45  ;;  %v3106_v8 = vstv %s3099_s12  ;;  %v973_v10 = vadd.f32 %v971_v18, %v2389_v9  ;;  %v975_v39 = vrot.slane %v947_v17, 7  ;;  %v1327_v18 = vld [vmem:[%s3077_s24 + $0x70] sm:$0xff] }
 0x140   : > { %v958_v23 = vmul.f32 %v3106_v8, %v907_v6  ;;  %1204 = vst [vmem:[%s2464_s29 + $0x58] sm:$0xff] %v796_v21  ;;  %v885_v61 = vsel %vm291_vm4, %v883_v58, %v884_v41  ;;  %v886_v62 = vsel %vm291_vm4, %v884_v41, %v883_v58  ;;  %v946_v48 = vadd.f32 %v944_v53, %v2460_v35  ;;  %s1239_s1 = sshll.u32 %s3114_s10, 11  ;;  %v1328_v53 = vld [vmem:[%s3077_s24 + $0x78] sm:$0xff]  ;;  %p3119_p13 = scmp.ne.s32.totalorder %s3117_s8, 0 }
 0x141   : > { %v954_v52 = vadd.f32 %v3108_v1, %v3107_v59  ;;  %1203 = vst [vmem:[%s2464_s29 + $0x50] sm:$0xff] %v795_v16  ;;  %v888_v4 = vsel %vm202_vm5, %v886_v62, 0.0  ;;  %v889_v9 = vadd.f32 %v885_v61, %v881_v24  ;;  %v3109_v30 = vmov %v3106_v8  ;;  %s2727_s26 = scalar_lea.hbm %s3118_s0, %s1239_s1 }
 0x142   : > { %v957_v29 = vmul.f32 %v3109_v30, %v906_v2  ;;  %v967_v40 = vadd.f32 %v3111_v27, %v3110_v44  ;;  %v890_v25 = vadd.f32 %v888_v4, %v882_v51  ;;  %v3113_v35 = vmov %v3101_v14  ;;  %p1374_p0 = pnand %p1373_p8, %p3119_p13 }
 0x143   : > { %v970_v20 = vmul.f32 %v3113_v35, %v906_v2  ;;  %v974_v54 = vrot.slane %v946_v48, 7  ;;  %v891_v26 = vadd.f32 %v1325_v3, %v889_v9  ;;  %v960_v41 = vadd.f32 %v958_v23, %v2386_v15 }
 0x144   : > { %v983_v43 = vrot.slane %v973_v10, 1  ;;  %v959_v57 = vadd.f32 %v957_v29, %v954_v52  ;;  %v892_v0 = vadd.f32 %v1326_v49, %v890_v25  ;;  %v3115_v6 = vstv %s3112_s17  ;;  %p1375_p2 = pneg %p1374_p0 }
 0x145   : > { %v972_v56 = vadd.f32 %v970_v20, %v967_v40  ;;  %v976_v55 = vsel %vm282_vm2, %v974_v54, %v975_v39  ;;  %v977_v7 = vsel %vm282_vm2, %v975_v39, %v974_v54  ;;  %v894_v2 = vadd.f32 %v3115_v6, %v891_v26 }
 0x146   : > { %v978_v15 = vsel %vm203_vm3, %v977_v7, 0.0  ;;  %v3116_v36 = vmov %v3115_v6  ;;  %v981_v22 = vadd.f32 %v976_v55, %v960_v41  ;;  %v992_v38 = vstv %s2694_s6  ;;  %p1382_p12 = pnand %p1381_p7, %p1375_p2 }
 0x147   : > { %v895_v33 = vadd.f32 %v3116_v36, %v892_v0  ;;  %v980_v32 = vadd.f32 %v978_v15, %v959_v57  ;;  %v982_v13 = vrot.slane %v972_v56, 1  ;;  %1217 = vst [vmem:[%s2464_s29 + $0x60] sm:$0xff] %v894_v2 }
 0x149   : > { %1218 = vst [vmem:[%s2464_s29 + $0x68] sm:$0xff] %v895_v33  ;;  %v984_v63 = vsel %vm291_vm4, %v982_v13, %v983_v43  ;;  %v985_v12 = vsel %vm291_vm4, %v983_v43, %v982_v13 }
 0x14a   : > { %v987_v50 = vsel %vm202_vm5, %v985_v12, 0.0  ;;  %v988_v5 = vadd.f32 %v984_v63, %v980_v32 }
 0x14b   : > { %v989_v14 = vadd.f32 %v987_v50, %v981_v22 }
 0x14c   : > { %v990_v47 = vadd.f32 %v1327_v18, %v988_v5 }
 0x14d   : > { %v991_v19 = vadd.f32 %v1328_v53, %v989_v14 }
 0x14e   : > { %v993_v45 = vadd.f32 %v992_v38, %v990_v47 }
 0x14f   : > { %v994_v28 = vadd.f32 %v992_v38, %v991_v19 }
 0x150   : > { %1231 = vst [vmem:[%s2464_s29 + $0x70] sm:$0xff] %v993_v45 }
 0x151   : > { %1232 = vst [vmem:[%s2464_s29 + $0x78] sm:$0xff] %v994_v28 }
 0x152   : > { %1385 = shalt.err (!%p1382_p12)
}
 0x153   : > { %s1386_s21 = scalar_lea.hbm %s2727_s26, 2048  ;;  %s1390_s30 = scalar_lea.hbm %s3118_s0, 4096 }
 0x154   : > { %p1387_p4 = scmp.ne.s32.totalorder %s2727_s26, %s1386_s21  ;;  %p1391_p5 = scmp.lt.u32.totalorder %s2727_s26, %s3118_s0 }
 0x155   : > { %p1392_p9 = scmp.lt.u32.totalorder %s1390_s30, %s1386_s21  ;;  %p1394_p8 = scmp.lt.u32.totalorder %s1386_s21, %s2727_s26 }
 0x156   : > { %p1388_p10 = pnand %p1387_p4, %p3119_p13 }
 0x157   : > { %p1393_p3 = por %p1392_p9, %p1391_p5 }
 0x158   : > { %p1389_p11 = pneg %p1388_p10 }
 0x159   : > { %p1395_p0 = por %p1394_p8, %p1393_p3 }
 0x15b   : > { %p1396_p2 = pnand %p1395_p0, %p1389_p11 }
 0x15d   : > { %1399 = shalt.err (!%p1396_p2)
}
 0x15e   : > { %s1467_s9 = smov 128   ;;  %s1468_s29 = smov 8  }
 0x15f   : > { %1246 = dma.vmem_to_hbm [thread:$0]  (%p3119_p13), %s2729_s28, 2048, %s2727_s26, %s999_s13, %s1467_s9, %s1467_s9, %s1468_s29  }
 0x160 PF: > { %s3120_s18 = sld [smem:[#allocation11_spill]]  ;;  %s3121_s4 = sld [smem:[#allocation18_spill]] }
 0x161   : > { %s3122_s5 = sld [smem:[#allocation16_spill]] }
 0x166   : > { %s1030_s20 = sand.u32 1, %s3120_s18   ;;  %p3123_p6 = scmp.ne.s32.totalorder %s3121_s4, 0 }
 0x167   : > { %p3124_p1 = scmp.ge.s32.totalorder %s3122_s5, 2  ;;  %s1031_s24 = scalar_lea.sflag [#allocation4], %s1030_s20 }
 0x169   : > { %p1257_p7 = pnand %p3124_p1, %p3123_p6 }
 0x16b   : > { %1433 = dma.done.wait (!%p1257_p7), %s1031_s24, 2048  }
 0x16c   : > { %1435 = vsyncadd (!%p1257_p7), %s1031_s24, 4294965248  ;;  %s19_s14 = sadd.s32 1, %s3122_s5   ;;  %s3125_s9 = sld [smem:[#allocation12_spill]] }
 0x16d   : > { %p16_p12 = scmp.ge.s32.totalorder %s19_s14, 4   ;;  %s3126_s10 = sld [smem:[#allocation13_spill]] }
 0x16e   : > { %s3127_s11 = sld [smem:[#allocation20_spill]]  ;;  %s3128_s12 = sld [smem:[#allocation15_spill]] }
 0x16f   : > { %s3129_s13 = sld [smem:[#allocation19_spill]]  ;;  %18 = sbr.rel (!%p16_p12) target bundleno = 11 (0xb), region = 92 }
 0x176   :  { %1036 = vsyncpa [#allocation3], 1 }
 0x177   :  { %1038 = vsyncpa [#allocation3 + $0x1], 1 }
 0x178   :  { %1039 = vsyncpa [#allocation4], 1 }
 0x179   :  { %1041 = vsyncpa [#allocation4 + $0x1], 1 }
 0x17a   :  { %1042 = vsyncpa [#allocation5], 1 }
 0x17b   :  { %1044 = vsyncpa [#allocation5 + $0x1], 1 }

</bundles_post_ra>
